<compile_context>
chip_gen: v5e
topology: v5e:2x2
jax: 0.10.0
libtpu: 0.0.40
codegen_flags: <defaults>
</compile_context>

<pallas_src>
import functools

import jax
import jax.numpy as jnp
from jax.experimental import pallas as pl
from jax.experimental.pallas import tpu as pltpu


# ----------------------------------------------------------------------------
# Fused Pallas kernel: VCR encoder layer followed by VVR encoder layer,
# one block of Bt batch elements per grid step.
#   x_ref:  [Bt, N, D]  target rows (qfea block)
#   k_ref:  [Bt, 1, D]  the single distinct VCR source row per batch
#   wslab:  [D, 8D] bf16 = [Wq^T | W1x^T | Wk^T | Wv^T | Wm^T | W1m^T]
#   w2:     [2D, D] bf16
#   ln:     [4, D]  f32  = [g1; b1; g2; b2]
# ----------------------------------------------------------------------------
def _fused_kernel(n_scale, x_ref, k_ref, wslab_ref, w2_ref, ln_ref, o_ref):
    Bt, N, D = x_ref.shape
    bf16, f32 = jnp.bfloat16, jnp.float32
    eps_attn = 1e-6
    eps_ln = 1e-5

    ln = ln_ref[...]
    g1, b1 = ln[0:1, :], ln[1:2, :]
    g2, b2 = ln[2:3, :], ln[3:4, :]
    w2 = w2_ref[...]

    def elu1(t):                                   # elu(t) + 1 (f32, VPU/EUP)
        return jnp.where(t > 0, t + 1.0, jnp.exp(t))

    def layer_norm(t, g, b):
        mu = jnp.mean(t, axis=-1, keepdims=True)
        var = jnp.mean((t - mu) ** 2, axis=-1, keepdims=True)
        return (t - mu) * jax.lax.rsqrt(var + eps_ln) * g + b

    def mlp_tail(xf, msg, xw1):
        # merge proj + LN1, then relu([x, msg] W1^T) W2^T + LN2 + residual;
        # the x-part of the MLP hidden (xw1) was fused into the Q projection.
        msg = jnp.dot(msg.astype(bf16), wslab_ref[:, 5 * D:6 * D],
                      preferred_element_type=f32)
        msg = layer_norm(msg, g1, b1)
        h = jnp.maximum(
            xw1 + jnp.dot(msg.astype(bf16), wslab_ref[:, 6 * D:8 * D],
                          preferred_element_type=f32), 0.0)
        m2 = jnp.dot(h.astype(bf16), w2, preferred_element_type=f32)
        return xf + layer_norm(m2, g2, b2)

    # ------------------------- Layer 1: VCR ---------------------------------
    # Source = one row per batch repeated N times in the original module;
    # Q (K^T V) collapses to (Q.K) V and sum_s K == N*K, so the attention is
    # a per-row scalar gate on V.  Projections run on flattened rows so the
    # MXU M dimension is Bt*N instead of N.
    xf = x_ref[...].reshape(Bt * N, D)                                  # f32
    q_x1 = jnp.dot(xf.astype(bf16), wslab_ref[:, 0:3 * D],
                   preferred_element_type=f32)                          # [Bt*N, 3D]
    Q = elu1(q_x1[:, 0:D])
    xw1 = q_x1[:, D:3 * D]

    sf = k_ref[...].reshape(Bt, D)
    kv = jnp.dot(sf.astype(bf16), wslab_ref[:, 3 * D:5 * D],
                 preferred_element_type=f32)                            # [Bt, 2D]
    K = elu1(kv[:, 0:D]) * n_scale                                      # [Bt, D]
    V = kv[:, D:2 * D]                                                  # [Bt, D]

    qk = jnp.sum(Q.reshape(Bt, N, D) * K[:, None, :],
                 axis=-1, keepdims=True)                                # [Bt, N, 1]
    msg1 = ((qk / (qk + eps_attn)) * V[:, None, :]).reshape(Bt * N, D)
    q1 = mlp_tail(xf, msg1, xw1)                                        # [Bt*N, D]

    # ------------------------- Layer 2: VVR ---------------------------------
    # x == s == q1 (distinct rows; multiplicity N folded into n_scale).  One
    # wide dot over the slab's first 5D columns yields Q, the x-part of the
    # MLP hidden, K and V in a single MXU pass.  Ls = N <= D, so use the
    # quadratic formulation S = Q K^T, z = rowsum(S) + eps, msg = (S V)/z.
    proj = jnp.dot(q1.astype(bf16), wslab_ref[:, 0:5 * D],
                   preferred_element_type=f32)                          # [Bt*N, 5D]
    Q2 = elu1(proj[:, 0:D]).reshape(Bt, N, D)
    xw1_2 = proj[:, D:3 * D]
    K2 = elu1(proj[:, 3 * D:4 * D]).reshape(Bt, N, D)
    V2 = proj[:, 4 * D:5 * D].reshape(Bt, N, D)

    S = jnp.einsum("bqd,bkd->bqk", Q2.astype(bf16), K2.astype(bf16),
                   preferred_element_type=f32) * n_scale                # [Bt, N, N]
    z = jnp.sum(S, axis=-1, keepdims=True) + eps_attn                   # [Bt, N, 1]
    num = jnp.einsum("bqk,bkd->bqd", S.astype(bf16), V2.astype(bf16),
                     preferred_element_type=f32)                        # [Bt, N, D]
    msg2 = (num / z).reshape(Bt * N, D)

    q2 = mlp_tail(q1, msg2, xw1_2)
    o_ref[...] = q2.reshape(Bt, N, D)


def _pick_block_batches(B, N, target_rows=256):
    """Largest divisor Bt of B with Bt*N <= target_rows (v6e/v7x MXU fill),
    while keeping >= 2 grid steps when B >= 2 (v7x has 2 TensorCores)."""
    bt = 1
    for d in range(1, B + 1):
        if B % d == 0 and d * N <= target_rows:
            bt = d
    if B >= 2 and B // bt < 2:
        for d in range(B // 2, 0, -1):
            if B % d == 0:
                bt = d
                break
    return bt


# ----------------------------------------------------------------------------
# CrossTransformer forward (layer_nums=1, nhead=1, shared encoder weights).
# Preconditions for the structural collapse: nhead == 1, mask1 is all-ones /
# mask0 is None, and the VCR/VVR layers share one set of encoder weights
# (exactly the module as written).
# ----------------------------------------------------------------------------
def cross_transformer_forward(qfea, kfea, prep):
    """qfea: [B, N, D] f32, kfea: [B, D] f32  ->  [B, N, N, D] f32."""
    B, N, D = qfea.shape
    assert D % 128 == 0, "D must be a multiple of 128 for lane-dense blocks"

    bt = _pick_block_batches(B, N)
    kernel = functools.partial(_fused_kernel, float(N))
    wslab, w2, ln = prep["wslab"], prep["w2"], prep["ln"]

    q2 = pl.pallas_call(
        kernel,
        out_shape=jax.ShapeDtypeStruct((B, N, D), jnp.float32),
        grid=(B // bt,),
        in_specs=[
            pl.BlockSpec((bt, N, D), lambda b: (b, 0, 0)),
            pl.BlockSpec((bt, 1, D), lambda b: (b, 0, 0)),
            pl.BlockSpec(wslab.shape, lambda b: (0, 0)),
            pl.BlockSpec(w2.shape, lambda b: (0, 0)),
            pl.BlockSpec(ln.shape, lambda b: (0, 0)),
        ],
        out_specs=pl.BlockSpec((bt, N, D), lambda b: (b, 0, 0)),
        compiler_params=pltpu.CompilerParams(
            dimension_semantics=("parallel",)),
    )(qfea, kfea[:, None, :], wslab, w2, ln)

    # The VVR output row for l = i*N + j depends only on j; keep the i-axis
    # duplication as a broadcast view so downstream consumers can fold it
    # instead of paying the [B, N, N, D] HBM write.
    return jnp.broadcast_to(q2[:, None, :, :], (B, N, N, D))


# ----------------------------------------------------------------------------
# Parameters: deterministic xavier_uniform for dim>1 weights; LN = (1, 0).
# prepare_params() hoists all transposes / packing / bf16 casts so they run
# exactly once.  Slab columns: [Wq^T | W1x^T | Wk^T | Wv^T | Wm^T | W1m^T].
# ----------------------------------------------------------------------------
def init_params(key, d_model):
    def xavier(k, shape):
        fan_out, fan_in = shape
        bound = (6.0 / (fan_in + fan_out)) ** 0.5
        return jax.random.uniform(k, shape, jnp.float32, -bound, bound)

    ks = jax.random.split(key, 6)
    D = d_model
    return {
        "wq": xavier(ks[0], (D, D)),
        "wk": xavier(ks[1], (D, D)),
        "wv": xavier(ks[2], (D, D)),
        "wm": xavier(ks[3], (D, D)),
        "w1": xavier(ks[4], (2 * D, 2 * D)),
        "w2": xavier(ks[5], (D, 2 * D)),
        "ln1_g": jnp.ones((D,), jnp.float32),
        "ln1_b": jnp.zeros((D,), jnp.float32),
        "ln2_g": jnp.ones((D,), jnp.float32),
        "ln2_b": jnp.zeros((D,), jnp.float32),
    }


def prepare_params(params):
    D = params["wq"].shape[0]
    w1_t = params["w1"].T                       # [2D, 2D]
    slab = jnp.concatenate(
        [params["wq"].T,        # [D, D]   -> cols [0, D)
         w1_t[:D],              # [D, 2D]  -> cols [D, 3D)
         params["wk"].T,        # [D, D]   -> cols [3D, 4D)
         params["wv"].T,        # [D, D]   -> cols [4D, 5D)
         params["wm"].T,        # [D, D]   -> cols [5D, 6D)
         w1_t[D:]],             # [D, 2D]  -> cols [6D, 8D)
        axis=1).astype(jnp.bfloat16)            # [D, 8D]
    return {
        "wslab": slab,
        "w2": params["w2"].T.astype(jnp.bfloat16),   # [2D, D]
        "ln": jnp.stack([params["ln1_g"], params["ln1_b"],
                         params["ln2_g"], params["ln2_b"]], axis=0),
    }


# ----------------------------------------------------------------------------
# Pure-JAX fp32 reference implementing the ORIGINAL (repeat/tile, [B, N^2, D])
# semantics — validates both the kernel and the structural optimizations.
# ----------------------------------------------------------------------------
def _encoder_ref(x, s, p):
    B, L, D = x.shape
    elu1 = lambda t: jnp.where(t > 0, t + 1.0, jnp.exp(t))
    Q = elu1(x @ p["wq"].T)
    K = elu1(s @ p["wk"].T)
    V = (s @ p["wv"].T) / L
    KV = jnp.einsum("bld,blv->bdv", K, V)
    Z = 1.0 / (jnp.einsum("bld,bd->bl", Q, K.sum(1)) + 1e-6)
    msg = jnp.einsum("bld,bdv,bl->blv", Q, KV, Z) * L
    msg = msg @ p["wm"].T

    def ln(t, g, b):
        mu = t.mean(-1, keepdims=True)
        var = ((t - mu) ** 2).mean(-1, keepdims=True)
        return (t - mu) / jnp.sqrt(var + 1e-5) * g + b

    msg = ln(msg, p["ln1_g"], p["ln1_b"])
    h = jnp.maximum(jnp.concatenate([x, msg], -1) @ p["w1"].T, 0.0)
    m2 = ln(h @ p["w2"].T, p["ln2_g"], p["ln2_b"])
    return x + m2


def _forward_ref(qfea, kfea, p):
    B, N, D = qfea.shape
    kf = jnp.broadcast_to(kfea[:, None, :], (B, N, D))
    qfea = _encoder_ref(qfea, kf, p)
    qe = jnp.repeat(qfea, N, axis=1)         # repeat(1,1,N).view
    qs = jnp.tile(qfea, (1, N, 1))           # repeat(1,N,1).view
    return _encoder_ref(qs, qe, p).reshape(B, N, N, D)


if __name__ == "__main__":
    B, N, D = 2, 8, 128
    key = jax.random.PRNGKey(0)
    kq, kk, kp = jax.random.split(key, 3)

    qfea = jax.random.normal(kq, (B, N, D), jnp.float32)
    kfea = jax.random.normal(kk, (B, D), jnp.float32)
    params = init_params(kp, D)
    prep = prepare_params(params)

    out = cross_transformer_forward(qfea, kfea, prep)
    out = jax.block_until_ready(out)
    assert out.shape == (B, N, N, D), out.shape

    ref = jax.block_until_ready(_forward_ref(qfea, kfea, params))
    # Tolerance accounts for bf16 MXU operands in the kernel vs. the pure-f32
    # reference; structural errors would be O(1).
    assert jnp.allclose(out, ref, rtol=3e-2, atol=3e-2), (
        float(jnp.max(jnp.abs(out - ref))))

    print("KERNEL_OK")
</pallas_src>

<mosaic_0001>
module attributes {stable_mosaic.version = 11 : i64} {
  func.func @_fused_kernel(%arg0: i32, %arg1: memref<1x8x128xf32, #tpu.memory_space<vmem>>, %arg2: memref<1x1x128xf32, #tpu.memory_space<vmem>>, %arg3: memref<128x1024xbf16, #tpu.memory_space<vmem>>, %arg4: memref<256x128xbf16, #tpu.memory_space<vmem>>, %arg5: memref<4x128xf32, #tpu.memory_space<vmem>>, %arg6: memref<1x8x128xf32, #tpu.memory_space<vmem>>) attributes {dimension_semantics = [#tpu.dimension_semantics<parallel>], iteration_bounds = array<i64: 2>, scalar_prefetch = 0 : i64, scratch_operands = 0 : i64, tpu.core_type = #tpu.core_type<tc>, window_params = [{transform_indices = @transform_0, window_bounds = array<i64: 1, 8, 128>}, {transform_indices = @transform_1, window_bounds = array<i64: 1, 1, 128>}, {pipeline_mode = #tpu.pipeline_mode<synchronous>, transform_indices = @transform_2, window_bounds = array<i64: 128, 1024>}, {pipeline_mode = #tpu.pipeline_mode<synchronous>, transform_indices = @transform_3, window_bounds = array<i64: 256, 128>}, {pipeline_mode = #tpu.pipeline_mode<synchronous>, transform_indices = @transform_4, window_bounds = array<i64: 4, 128>}, {transform_indices = @transform_5, window_bounds = array<i64: 1, 8, 128>}]} {
    %c0 = arith.constant 0 : index
    %c0_0 = arith.constant 0 : index
    %0 = vector.load %arg5[%c0, %c0_0] : memref<4x128xf32, #tpu.memory_space<vmem>>, vector<4x128xf32>
    %1 = vector.extract_strided_slice %0 {offsets = [0, 0], sizes = [1, 128], strides = [1, 1]} : vector<4x128xf32> to vector<1x128xf32>
    %2 = vector.extract_strided_slice %0 {offsets = [1, 0], sizes = [1, 128], strides = [1, 1]} : vector<4x128xf32> to vector<1x128xf32>
    %3 = vector.extract_strided_slice %0 {offsets = [2, 0], sizes = [1, 128], strides = [1, 1]} : vector<4x128xf32> to vector<1x128xf32>
    %4 = vector.extract_strided_slice %0 {offsets = [3, 0], sizes = [1, 128], strides = [1, 1]} : vector<4x128xf32> to vector<1x128xf32>
    %c0_1 = arith.constant 0 : index
    %c0_2 = arith.constant 0 : index
    %5 = vector.load %arg4[%c0_1, %c0_2] : memref<256x128xbf16, #tpu.memory_space<vmem>>, vector<256x128xbf16>
    %c0_3 = arith.constant 0 : index
    %c0_4 = arith.constant 0 : index
    %c0_5 = arith.constant 0 : index
    %6 = vector.load %arg1[%c0_3, %c0_4, %c0_5] : memref<1x8x128xf32, #tpu.memory_space<vmem>>, vector<1x8x128xf32>
    %7 = vector.shape_cast %6 : vector<1x8x128xf32> to vector<8x128xf32>
    %8 = arith.truncf %7 : vector<8x128xf32> to vector<8x128xbf16>
    %c0_6 = arith.constant 0 : index
    %c0_7 = arith.constant 0 : index
    %9 = vector.load %arg3[%c0_6, %c0_7] : memref<128x1024xbf16, #tpu.memory_space<vmem>>, vector<128x384xbf16>
    %cst = arith.constant dense<0.000000e+00> : vector<8x384xf32>
    %10 = tpu.matmul %8, %9, %cst {dimension_numbers = #tpu.dot_dimension_numbers<[1], [0], [0], [1], [0, 0, 1, 1], [], []>} : vector<8x128xbf16>, vector<128x384xbf16>, vector<8x384xf32> -> vector<8x384xf32>
    %11 = vector.extract_strided_slice %10 {offsets = [0, 0], sizes = [8, 128], strides = [1, 1]} : vector<8x384xf32> to vector<8x128xf32>
    %cst_8 = arith.constant 0.000000e+00 : f32
    %12 = vector.broadcast %cst_8 : f32 to vector<8x128xf32>
    %13 = arith.cmpf ogt, %11, %12 : vector<8x128xf32>
    %cst_9 = arith.constant 1.000000e+00 : f32
    %14 = vector.broadcast %cst_9 : f32 to vector<8x128xf32>
    %15 = arith.addf %11, %14 : vector<8x128xf32>
    %16 = math.exp %11 : vector<8x128xf32>
    %17 = arith.select %13, %15, %16 : vector<8x128xi1>, vector<8x128xf32>
    %18 = vector.extract_strided_slice %10 {offsets = [0, 128], sizes = [8, 256], strides = [1, 1]} : vector<8x384xf32> to vector<8x256xf32>
    %c0_10 = arith.constant 0 : index
    %c0_11 = arith.constant 0 : index
    %c0_12 = arith.constant 0 : index
    %19 = vector.load %arg2[%c0_10, %c0_11, %c0_12] : memref<1x1x128xf32, #tpu.memory_space<vmem>>, vector<1x1x128xf32>
    %20 = vector.shape_cast %19 : vector<1x1x128xf32> to vector<1x128xf32>
    %21 = arith.truncf %20 : vector<1x128xf32> to vector<1x128xbf16>
    %c0_13 = arith.constant 0 : index
    %c384 = arith.constant 384 : index
    %22 = vector.load %arg3[%c0_13, %c384] : memref<128x1024xbf16, #tpu.memory_space<vmem>>, vector<128x256xbf16>
    %cst_14 = arith.constant dense<0.000000e+00> : vector<1x256xf32>
    %23 = tpu.matmul %21, %22, %cst_14 {dimension_numbers = #tpu.dot_dimension_numbers<[1], [0], [0], [1], [0, 0, 1, 1], [], []>} : vector<1x128xbf16>, vector<128x256xbf16>, vector<1x256xf32> -> vector<1x256xf32>
    %24 = vector.extract_strided_slice %23 {offsets = [0, 0], sizes = [1, 128], strides = [1, 1]} : vector<1x256xf32> to vector<1x128xf32>
    %cst_15 = arith.constant 0.000000e+00 : f32
    %25 = vector.broadcast %cst_15 : f32 to vector<1x128xf32>
    %26 = arith.cmpf ogt, %24, %25 : vector<1x128xf32>
    %cst_16 = arith.constant 1.000000e+00 : f32
    %27 = vector.broadcast %cst_16 : f32 to vector<1x128xf32>
    %28 = arith.addf %24, %27 : vector<1x128xf32>
    %29 = math.exp %24 : vector<1x128xf32>
    %30 = arith.select %26, %28, %29 : vector<1x128xi1>, vector<1x128xf32>
    %cst_17 = arith.constant 8.000000e+00 : f32
    %31 = vector.broadcast %cst_17 : f32 to vector<1x128xf32>
    %32 = arith.mulf %30, %31 : vector<1x128xf32>
    %33 = vector.extract_strided_slice %23 {offsets = [0, 128], sizes = [1, 128], strides = [1, 1]} : vector<1x256xf32> to vector<1x128xf32>
    %34 = vector.shape_cast %17 : vector<8x128xf32> to vector<1x8x128xf32>
    %35 = vector.shape_cast %32 : vector<1x128xf32> to vector<1x1x128xf32>
    %36 = vector.broadcast %35 : vector<1x1x128xf32> to vector<1x8x128xf32>
    %37 = arith.mulf %34, %36 : vector<1x8x128xf32>
    %cst_18 = arith.constant dense<0.000000e+00> : vector<1x8xf32>
    %38 = vector.multi_reduction <add>, %37, %cst_18 [2] : vector<1x8x128xf32> to vector<1x8xf32>
    %39 = vector.shape_cast %38 : vector<1x8xf32> to vector<1x8x1xf32>
    %cst_19 = arith.constant 9.99999997E-7 : f32
    %40 = vector.broadcast %cst_19 : f32 to vector<1x8x1xf32>
    %41 = arith.addf %39, %40 : vector<1x8x1xf32>
    %42 = arith.divf %39, %41 : vector<1x8x1xf32>
    %43 = vector.shape_cast %33 : vector<1x128xf32> to vector<1x1x128xf32>
    %44 = vector.broadcast %42 : vector<1x8x1xf32> to vector<1x8x128xf32>
    %45 = vector.broadcast %43 : vector<1x1x128xf32> to vector<1x8x128xf32>
    %46 = arith.mulf %44, %45 : vector<1x8x128xf32>
    %47 = vector.shape_cast %46 : vector<1x8x128xf32> to vector<8x128xf32>
    %48 = arith.truncf %47 : vector<8x128xf32> to vector<8x128xbf16>
    %c0_20 = arith.constant 0 : index
    %c640 = arith.constant 640 : index
    %49 = vector.load %arg3[%c0_20, %c640] : memref<128x1024xbf16, #tpu.memory_space<vmem>>, vector<128x128xbf16>
    %cst_21 = arith.constant dense<0.000000e+00> : vector<8x128xf32>
    %50 = tpu.matmul %48, %49, %cst_21 {dimension_numbers = #tpu.dot_dimension_numbers<[1], [0], [0], [1], [0, 0, 1, 1], [], []>} : vector<8x128xbf16>, vector<128x128xbf16>, vector<8x128xf32> -> vector<8x128xf32>
    %cst_22 = arith.constant dense<0.000000e+00> : vector<8xf32>
    %51 = vector.multi_reduction <add>, %50, %cst_22 [1] : vector<8x128xf32> to vector<8xf32>
    %52 = vector.shape_cast %51 : vector<8xf32> to vector<8x1xf32>
    %cst_23 = arith.constant 1.280000e+02 : f32
    %53 = vector.broadcast %cst_23 : f32 to vector<8x1xf32>
    %54 = arith.divf %52, %53 : vector<8x1xf32>
    %55 = vector.broadcast %54 : vector<8x1xf32> to vector<8x128xf32>
    %56 = arith.subf %50, %55 : vector<8x128xf32>
    %57 = arith.mulf %56, %56 : vector<8x128xf32>
    %cst_24 = arith.constant dense<0.000000e+00> : vector<8xf32>
    %58 = vector.multi_reduction <add>, %57, %cst_24 [1] : vector<8x128xf32> to vector<8xf32>
    %59 = vector.shape_cast %58 : vector<8xf32> to vector<8x1xf32>
    %cst_25 = arith.constant 1.280000e+02 : f32
    %60 = vector.broadcast %cst_25 : f32 to vector<8x1xf32>
    %61 = arith.divf %59, %60 : vector<8x1xf32>
    %62 = vector.broadcast %54 : vector<8x1xf32> to vector<8x128xf32>
    %63 = arith.subf %50, %62 : vector<8x128xf32>
    %cst_26 = arith.constant 9.99999974E-6 : f32
    %64 = vector.broadcast %cst_26 : f32 to vector<8x1xf32>
    %65 = arith.addf %61, %64 : vector<8x1xf32>
    %66 = math.rsqrt %65 : vector<8x1xf32>
    %67 = vector.broadcast %66 : vector<8x1xf32> to vector<8x128xf32>
    %68 = arith.mulf %63, %67 : vector<8x128xf32>
    %69 = vector.broadcast %1 : vector<1x128xf32> to vector<8x128xf32>
    %70 = arith.mulf %68, %69 : vector<8x128xf32>
    %71 = vector.broadcast %2 : vector<1x128xf32> to vector<8x128xf32>
    %72 = arith.addf %70, %71 : vector<8x128xf32>
    %73 = arith.truncf %72 : vector<8x128xf32> to vector<8x128xbf16>
    %c0_27 = arith.constant 0 : index
    %c768 = arith.constant 768 : index
    %74 = vector.load %arg3[%c0_27, %c768] : memref<128x1024xbf16, #tpu.memory_space<vmem>>, vector<128x256xbf16>
    %cst_28 = arith.constant dense<0.000000e+00> : vector<8x256xf32>
    %75 = tpu.matmul %73, %74, %cst_28 {dimension_numbers = #tpu.dot_dimension_numbers<[1], [0], [0], [1], [0, 0, 1, 1], [], []>} : vector<8x128xbf16>, vector<128x256xbf16>, vector<8x256xf32> -> vector<8x256xf32>
    %76 = arith.addf %18, %75 : vector<8x256xf32>
    %cst_29 = arith.constant 0.000000e+00 : f32
    %77 = vector.broadcast %cst_29 : f32 to vector<8x256xf32>
    %78 = arith.maximumf %76, %77 : vector<8x256xf32>
    %79 = arith.truncf %78 : vector<8x256xf32> to vector<8x256xbf16>
    %cst_30 = arith.constant dense<0.000000e+00> : vector<8x128xf32>
    %80 = tpu.matmul %79, %5, %cst_30 {dimension_numbers = #tpu.dot_dimension_numbers<[1], [0], [0], [1], [0, 0, 1, 1], [], []>} : vector<8x256xbf16>, vector<256x128xbf16>, vector<8x128xf32> -> vector<8x128xf32>
    %cst_31 = arith.constant dense<0.000000e+00> : vector<8xf32>
    %81 = vector.multi_reduction <add>, %80, %cst_31 [1] : vector<8x128xf32> to vector<8xf32>
    %82 = vector.shape_cast %81 : vector<8xf32> to vector<8x1xf32>
    %cst_32 = arith.constant 1.280000e+02 : f32
    %83 = vector.broadcast %cst_32 : f32 to vector<8x1xf32>
    %84 = arith.divf %82, %83 : vector<8x1xf32>
    %85 = vector.broadcast %84 : vector<8x1xf32> to vector<8x128xf32>
    %86 = arith.subf %80, %85 : vector<8x128xf32>
    %87 = arith.mulf %86, %86 : vector<8x128xf32>
    %cst_33 = arith.constant dense<0.000000e+00> : vector<8xf32>
    %88 = vector.multi_reduction <add>, %87, %cst_33 [1] : vector<8x128xf32> to vector<8xf32>
    %89 = vector.shape_cast %88 : vector<8xf32> to vector<8x1xf32>
    %cst_34 = arith.constant 1.280000e+02 : f32
    %90 = vector.broadcast %cst_34 : f32 to vector<8x1xf32>
    %91 = arith.divf %89, %90 : vector<8x1xf32>
    %92 = vector.broadcast %84 : vector<8x1xf32> to vector<8x128xf32>
    %93 = arith.subf %80, %92 : vector<8x128xf32>
    %cst_35 = arith.constant 9.99999974E-6 : f32
    %94 = vector.broadcast %cst_35 : f32 to vector<8x1xf32>
    %95 = arith.addf %91, %94 : vector<8x1xf32>
    %96 = math.rsqrt %95 : vector<8x1xf32>
    %97 = vector.broadcast %96 : vector<8x1xf32> to vector<8x128xf32>
    %98 = arith.mulf %93, %97 : vector<8x128xf32>
    %99 = vector.broadcast %3 : vector<1x128xf32> to vector<8x128xf32>
    %100 = arith.mulf %98, %99 : vector<8x128xf32>
    %101 = vector.broadcast %4 : vector<1x128xf32> to vector<8x128xf32>
    %102 = arith.addf %100, %101 : vector<8x128xf32>
    %103 = arith.addf %7, %102 : vector<8x128xf32>
    %104 = arith.truncf %103 : vector<8x128xf32> to vector<8x128xbf16>
    %c0_36 = arith.constant 0 : index
    %c0_37 = arith.constant 0 : index
    %105 = vector.load %arg3[%c0_36, %c0_37] : memref<128x1024xbf16, #tpu.memory_space<vmem>>, vector<128x640xbf16>
    %cst_38 = arith.constant dense<0.000000e+00> : vector<8x640xf32>
    %106 = tpu.matmul %104, %105, %cst_38 {dimension_numbers = #tpu.dot_dimension_numbers<[1], [0], [0], [1], [0, 0, 1, 1], [], []>} : vector<8x128xbf16>, vector<128x640xbf16>, vector<8x640xf32> -> vector<8x640xf32>
    %107 = vector.extract_strided_slice %106 {offsets = [0, 0], sizes = [8, 128], strides = [1, 1]} : vector<8x640xf32> to vector<8x128xf32>
    %cst_39 = arith.constant 0.000000e+00 : f32
    %108 = vector.broadcast %cst_39 : f32 to vector<8x128xf32>
    %109 = arith.cmpf ogt, %107, %108 : vector<8x128xf32>
    %cst_40 = arith.constant 1.000000e+00 : f32
    %110 = vector.broadcast %cst_40 : f32 to vector<8x128xf32>
    %111 = arith.addf %107, %110 : vector<8x128xf32>
    %112 = math.exp %107 : vector<8x128xf32>
    %113 = arith.select %109, %111, %112 : vector<8x128xi1>, vector<8x128xf32>
    %114 = vector.shape_cast %113 : vector<8x128xf32> to vector<1x8x128xf32>
    %115 = vector.extract_strided_slice %106 {offsets = [0, 128], sizes = [8, 256], strides = [1, 1]} : vector<8x640xf32> to vector<8x256xf32>
    %116 = vector.extract_strided_slice %106 {offsets = [0, 384], sizes = [8, 128], strides = [1, 1]} : vector<8x640xf32> to vector<8x128xf32>
    %cst_41 = arith.constant 0.000000e+00 : f32
    %117 = vector.broadcast %cst_41 : f32 to vector<8x128xf32>
    %118 = arith.cmpf ogt, %116, %117 : vector<8x128xf32>
    %cst_42 = arith.constant 1.000000e+00 : f32
    %119 = vector.broadcast %cst_42 : f32 to vector<8x128xf32>
    %120 = arith.addf %116, %119 : vector<8x128xf32>
    %121 = math.exp %116 : vector<8x128xf32>
    %122 = arith.select %118, %120, %121 : vector<8x128xi1>, vector<8x128xf32>
    %123 = vector.shape_cast %122 : vector<8x128xf32> to vector<1x8x128xf32>
    %124 = vector.extract_strided_slice %106 {offsets = [0, 512], sizes = [8, 128], strides = [1, 1]} : vector<8x640xf32> to vector<8x128xf32>
    %125 = vector.shape_cast %124 : vector<8x128xf32> to vector<1x8x128xf32>
    %126 = arith.truncf %114 : vector<1x8x128xf32> to vector<1x8x128xbf16>
    %127 = arith.truncf %123 : vector<1x8x128xf32> to vector<1x8x128xbf16>
    "tpu.trace_start"() <{level = 10 : i32, message = "bqd,bkd->bqk"}> : () -> ()
    %cst_43 = arith.constant dense<0.000000e+00> : vector<1x8x8xf32>
    %128 = tpu.matmul %126, %127, %cst_43 {dimension_numbers = #tpu.dot_dimension_numbers<[2], [2], [1], [1], [0, 0, 0, 1, 1, 1], [0], [0]>} : vector<1x8x128xbf16>, vector<1x8x128xbf16>, vector<1x8x8xf32> -> vector<1x8x8xf32>
    "tpu.trace_stop"() : () -> ()
    %cst_44 = arith.constant 8.000000e+00 : f32
    %129 = vector.broadcast %cst_44 : f32 to vector<1x8x8xf32>
    %130 = arith.mulf %128, %129 : vector<1x8x8xf32>
    %cst_45 = arith.constant dense<0.000000e+00> : vector<1x8xf32>
    %131 = vector.multi_reduction <add>, %130, %cst_45 [2] : vector<1x8x8xf32> to vector<1x8xf32>
    %132 = vector.shape_cast %131 : vector<1x8xf32> to vector<1x8x1xf32>
    %cst_46 = arith.constant 9.99999997E-7 : f32
    %133 = vector.broadcast %cst_46 : f32 to vector<1x8x1xf32>
    %134 = arith.addf %132, %133 : vector<1x8x1xf32>
    %135 = arith.truncf %130 : vector<1x8x8xf32> to vector<1x8x8xbf16>
    %136 = arith.truncf %125 : vector<1x8x128xf32> to vector<1x8x128xbf16>
    "tpu.trace_start"() <{level = 10 : i32, message = "bqk,bkd->bqd"}> : () -> ()
    %cst_47 = arith.constant dense<0.000000e+00> : vector<1x8x128xf32>
    %137 = tpu.matmul %135, %136, %cst_47 {dimension_numbers = #tpu.dot_dimension_numbers<[2], [1], [1], [2], [0, 0, 0, 1, 1, 2], [0], [0]>} : vector<1x8x8xbf16>, vector<1x8x128xbf16>, vector<1x8x128xf32> -> vector<1x8x128xf32>
    "tpu.trace_stop"() : () -> ()
    %138 = vector.broadcast %134 : vector<1x8x1xf32> to vector<1x8x128xf32>
    %139 = arith.divf %137, %138 : vector<1x8x128xf32>
    %140 = vector.shape_cast %139 : vector<1x8x128xf32> to vector<8x128xf32>
    %141 = arith.truncf %140 : vector<8x128xf32> to vector<8x128xbf16>
    %c0_48 = arith.constant 0 : index
    %c640_49 = arith.constant 640 : index
    %142 = vector.load %arg3[%c0_48, %c640_49] : memref<128x1024xbf16, #tpu.memory_space<vmem>>, vector<128x128xbf16>
    %cst_50 = arith.constant dense<0.000000e+00> : vector<8x128xf32>
    %143 = tpu.matmul %141, %142, %cst_50 {dimension_numbers = #tpu.dot_dimension_numbers<[1], [0], [0], [1], [0, 0, 1, 1], [], []>} : vector<8x128xbf16>, vector<128x128xbf16>, vector<8x128xf32> -> vector<8x128xf32>
    %cst_51 = arith.constant dense<0.000000e+00> : vector<8xf32>
    %144 = vector.multi_reduction <add>, %143, %cst_51 [1] : vector<8x128xf32> to vector<8xf32>
    %145 = vector.shape_cast %144 : vector<8xf32> to vector<8x1xf32>
    %cst_52 = arith.constant 1.280000e+02 : f32
    %146 = vector.broadcast %cst_52 : f32 to vector<8x1xf32>
    %147 = arith.divf %145, %146 : vector<8x1xf32>
    %148 = vector.broadcast %147 : vector<8x1xf32> to vector<8x128xf32>
    %149 = arith.subf %143, %148 : vector<8x128xf32>
    %150 = arith.mulf %149, %149 : vector<8x128xf32>
    %cst_53 = arith.constant dense<0.000000e+00> : vector<8xf32>
    %151 = vector.multi_reduction <add>, %150, %cst_53 [1] : vector<8x128xf32> to vector<8xf32>
    %152 = vector.shape_cast %151 : vector<8xf32> to vector<8x1xf32>
    %cst_54 = arith.constant 1.280000e+02 : f32
    %153 = vector.broadcast %cst_54 : f32 to vector<8x1xf32>
    %154 = arith.divf %152, %153 : vector<8x1xf32>
    %155 = vector.broadcast %147 : vector<8x1xf32> to vector<8x128xf32>
    %156 = arith.subf %143, %155 : vector<8x128xf32>
    %cst_55 = arith.constant 9.99999974E-6 : f32
    %157 = vector.broadcast %cst_55 : f32 to vector<8x1xf32>
    %158 = arith.addf %154, %157 : vector<8x1xf32>
    %159 = math.rsqrt %158 : vector<8x1xf32>
    %160 = vector.broadcast %159 : vector<8x1xf32> to vector<8x128xf32>
    %161 = arith.mulf %156, %160 : vector<8x128xf32>
    %162 = vector.broadcast %1 : vector<1x128xf32> to vector<8x128xf32>
    %163 = arith.mulf %161, %162 : vector<8x128xf32>
    %164 = vector.broadcast %2 : vector<1x128xf32> to vector<8x128xf32>
    %165 = arith.addf %163, %164 : vector<8x128xf32>
    %166 = arith.truncf %165 : vector<8x128xf32> to vector<8x128xbf16>
    %c0_56 = arith.constant 0 : index
    %c768_57 = arith.constant 768 : index
    %167 = vector.load %arg3[%c0_56, %c768_57] : memref<128x1024xbf16, #tpu.memory_space<vmem>>, vector<128x256xbf16>
    %cst_58 = arith.constant dense<0.000000e+00> : vector<8x256xf32>
    %168 = tpu.matmul %166, %167, %cst_58 {dimension_numbers = #tpu.dot_dimension_numbers<[1], [0], [0], [1], [0, 0, 1, 1], [], []>} : vector<8x128xbf16>, vector<128x256xbf16>, vector<8x256xf32> -> vector<8x256xf32>
    %169 = arith.addf %115, %168 : vector<8x256xf32>
    %cst_59 = arith.constant 0.000000e+00 : f32
    %170 = vector.broadcast %cst_59 : f32 to vector<8x256xf32>
    %171 = arith.maximumf %169, %170 : vector<8x256xf32>
    %172 = arith.truncf %171 : vector<8x256xf32> to vector<8x256xbf16>
    %cst_60 = arith.constant dense<0.000000e+00> : vector<8x128xf32>
    %173 = tpu.matmul %172, %5, %cst_60 {dimension_numbers = #tpu.dot_dimension_numbers<[1], [0], [0], [1], [0, 0, 1, 1], [], []>} : vector<8x256xbf16>, vector<256x128xbf16>, vector<8x128xf32> -> vector<8x128xf32>
    %cst_61 = arith.constant dense<0.000000e+00> : vector<8xf32>
    %174 = vector.multi_reduction <add>, %173, %cst_61 [1] : vector<8x128xf32> to vector<8xf32>
    %175 = vector.shape_cast %174 : vector<8xf32> to vector<8x1xf32>
    %cst_62 = arith.constant 1.280000e+02 : f32
    %176 = vector.broadcast %cst_62 : f32 to vector<8x1xf32>
    %177 = arith.divf %175, %176 : vector<8x1xf32>
    %178 = vector.broadcast %177 : vector<8x1xf32> to vector<8x128xf32>
    %179 = arith.subf %173, %178 : vector<8x128xf32>
    %180 = arith.mulf %179, %179 : vector<8x128xf32>
    %cst_63 = arith.constant dense<0.000000e+00> : vector<8xf32>
    %181 = vector.multi_reduction <add>, %180, %cst_63 [1] : vector<8x128xf32> to vector<8xf32>
    %182 = vector.shape_cast %181 : vector<8xf32> to vector<8x1xf32>
    %cst_64 = arith.constant 1.280000e+02 : f32
    %183 = vector.broadcast %cst_64 : f32 to vector<8x1xf32>
    %184 = arith.divf %182, %183 : vector<8x1xf32>
    %185 = vector.broadcast %177 : vector<8x1xf32> to vector<8x128xf32>
    %186 = arith.subf %173, %185 : vector<8x128xf32>
    %cst_65 = arith.constant 9.99999974E-6 : f32
    %187 = vector.broadcast %cst_65 : f32 to vector<8x1xf32>
    %188 = arith.addf %184, %187 : vector<8x1xf32>
    %189 = math.rsqrt %188 : vector<8x1xf32>
    %190 = vector.broadcast %189 : vector<8x1xf32> to vector<8x128xf32>
    %191 = arith.mulf %186, %190 : vector<8x128xf32>
    %192 = vector.broadcast %3 : vector<1x128xf32> to vector<8x128xf32>
    %193 = arith.mulf %191, %192 : vector<8x128xf32>
    %194 = vector.broadcast %4 : vector<1x128xf32> to vector<8x128xf32>
    %195 = arith.addf %193, %194 : vector<8x128xf32>
    %196 = arith.addf %103, %195 : vector<8x128xf32>
    %197 = vector.shape_cast %196 : vector<8x128xf32> to vector<1x8x128xf32>
    %c0_66 = arith.constant 0 : index
    %c0_67 = arith.constant 0 : index
    %c0_68 = arith.constant 0 : index
    %198 = vector.load %arg6[%c0_66, %c0_67, %c0_68] : memref<1x8x128xf32, #tpu.memory_space<vmem>>, vector<1x8x128xf32>
    tpu.vector_store %arg6[%c0_66, %c0_67, %c0_68], %197 {strides = array<i32>} : memref<1x8x128xf32, #tpu.memory_space<vmem>>, vector<1x8x128xf32>,
    return
  }
  func.func @transform_0(%arg0: i32) -> (i32, i32, i32) {
    %c0_i32 = arith.constant 0 : i32
    %c0_i32_0 = arith.constant 0 : i32
    %c0_i32_1 = arith.constant 0 : i32
    return %arg0, %c0_i32, %c0_i32_0 : i32, i32, i32
  }
  func.func @transform_1(%arg0: i32) -> (i32, i32, i32) {
    %c0_i32 = arith.constant 0 : i32
    %c0_i32_0 = arith.constant 0 : i32
    %c0_i32_1 = arith.constant 0 : i32
    return %arg0, %c0_i32, %c0_i32_0 : i32, i32, i32
  }
  func.func @transform_2(%arg0: i32) -> (i32, i32) {
    %c0_i32 = arith.constant 0 : i32
    %c0_i32_0 = arith.constant 0 : i32
    %c0_i32_1 = arith.constant 0 : i32
    return %c0_i32, %c0_i32_0 : i32, i32
  }
  func.func @transform_3(%arg0: i32) -> (i32, i32) {
    %c0_i32 = arith.constant 0 : i32
    %c0_i32_0 = arith.constant 0 : i32
    %c0_i32_1 = arith.constant 0 : i32
    return %c0_i32, %c0_i32_0 : i32, i32
  }
  func.func @transform_4(%arg0: i32) -> (i32, i32) {
    %c0_i32 = arith.constant 0 : i32
    %c0_i32_0 = arith.constant 0 : i32
    %c0_i32_1 = arith.constant 0 : i32
    return %c0_i32, %c0_i32_0 : i32, i32
  }
  func.func @transform_5(%arg0: i32) -> (i32, i32, i32) {
    %c0_i32 = arith.constant 0 : i32
    %c0_i32_0 = arith.constant 0 : i32
    %c0_i32_1 = arith.constant 0 : i32
    return %arg0, %c0_i32, %c0_i32_0 : i32, i32, i32
  }
}

</mosaic_0001>

<bundles_post_ra>
// kernel: tpu_custom_call.1
= control target key start
LH: loop header
LB: loop body
LE: loop exit
PB: predicated region body
PF: predicated region fallthrough
CT: control target
= control target key end

     0   :  { %s3352_s0 = inlined_call_operand.hbm [shape: f32[2,8,128], index: 0, kind: input, shape index: {}]   ;;  %s3353_s1 = inlined_call_operand.hbm [shape: f32[2,1,128], index: 1, kind: input, shape index: {}]   ;;  %s3354_s2 = inlined_call_operand.hbm [shape: bf16[128,1024], index: 2, kind: input, shape index: {}]   ;;  %s3355_s3 = inlined_call_operand.hbm [shape: bf16[256,128], index: 3, kind: input, shape index: {}]   ;;  %s3356_s4 = inlined_call_operand.hbm [shape: f32[4,128], index: 4, kind: input, shape index: {}]   ;;  %s3357_s5 = inlined_call_operand.hbm [shape: f32[2,8,128], index: 5, kind: output, shape index: {}]  }
   0x1   :  { %3358 = sst [smem:[#allocation18_spill]] %s3354_s2 }
   0x2   :  { %3359 = sst [smem:[#allocation19_spill]] %s3355_s3 }
   0x3   :  { %3360 = sst [smem:[#allocation20_spill]] %s3356_s4 }
   0x4   :  { %10 = vsyncpa [#allocation3], 0 }
   0x5   :  { %12 = vsyncpa [#allocation3 + $0x1], 0 }
   0x6   :  { %13 = vsyncpa [#allocation6], 0 }
   0x7   :  { %15 = vsyncpa [#allocation6 + $0x1], 0 }
   0x8   :  { %16 = vsyncpa [#allocation9], 0 }
   0x9   :  { %17 = vsyncpa [#allocation4], 0 }
   0xa   :  { %19 = vsyncpa [#allocation4 + $0x1], 0  ;;  %s3020_s18 = smov 0   ;;  %s3022_s19 = smov 0  }
   0xb   :  { %s3024_s20 = smov 0   ;;  %s3026_s21 = smov 0  }
   0xc LB: > { %s3361_s2 = sld [smem:[#allocation18_spill]]  ;;  %s3044_s25 = sadd.s32 4294967295, %s2980_s21   ;;  %s2980_s21 = sphi %s3026_s21, %s3377_s21   ;;  %s2976_s20 = sphi %s3024_s20, %s3376_s20   ;;  %s2972_s19 = sphi %s3022_s19, %s3375_s19   ;;  %s2968_s18 = sphi %s3020_s18, %s3374_s18  }
   0xd   : > { %p1904_p0 = scmp.ge.s32.totalorder %s2980_s21, 1  ;;  %p46_p1 = scmp.eq.s32.totalorder %s3044_s25, 0 }
   0xe   : > { %p171_p2 = scmp.lt.s32.totalorder %s2980_s21, 3  ;;  %s2982_s27 = smov [#allocation7]  }
   0xf   : > { %s184_s28 = sshll.u32 %s2982_s27, 4  ;;  %s3363_s3 = sld [smem:[#allocation19_spill]]  ;;  %s185_s28 = int_to_ptr.vmem [resolvable:$true] %s184_s28 }
  0x10   : > { %p3049_p3 = pnand %p1904_p0, %p171_p2  ;;  %s2983_s8 = smov [#allocation8]  }
  0x11   : > { %s198_s9 = sshll.u32 %s2983_s8, 4  ;;  %s2984_s10 = smov 512   ;;  %s199_s9 = int_to_ptr.vmem [resolvable:$true] %s198_s9 }
  0x12   : > { %s182_s24 = sshll.u32 %s3361_s2, 4  ;;  %p2660_p4 = pneg %p3049_p3  ;;  %s183_s24 = int_to_ptr.hbm [resolvable:$true] %s182_s24 }
  0x13   : > { %s2985_s11 = smov 32   ;;  %s2986_s12 = smov 64  }
  0x14   : > { %p3061_p6 = pnand %p2660_p4, %p46_p1  ;;  %s2987_s13 = smov 4  }
  0x15   : > { %s196_s6 = sshll.u32 %s3363_s3, 4  ;;  %s3365_s4 = sld [smem:[#allocation20_spill]]  ;;  %s197_s6 = int_to_ptr.hbm [resolvable:$true] %s196_s6 }
  0x16   : > { %2663 = dma.hbm_to_vmem [thread:$0]  (!%p3061_p6), %s183_s24, 8192, %s185_s28, [#allocation6], %s2984_s10, %s2984_s10, %s2985_s11  }
  0x17   : > { %2666 = dma.hbm_to_vmem [thread:$0]  (!%p3061_p6), %s197_s6, 2048, %s199_s9, [#allocation9], %s2986_s12, %s2986_s12, %s2987_s13  }
  0x18   : > { %s2988_s17 = smov [#allocation10]   ;;  %s1903_s23 = sadd.s32 4294967294, %s2980_s21  }
  0x19   : > { %s213_s22 = sshll.u32 %s2988_s17, 4  ;;  %s3076_s24 = sadd.s32 1, %s2980_s21   ;;  %s214_s22 = int_to_ptr.vmem [resolvable:$true] %s213_s22 }
  0x1a   : > { %s32_s27 = sadd.s32 1, %s2976_s20  ;;  %s29_s28 = ssub.s32 %s2980_s21, %s3076_s24 }
  0x1b   : > { %s211_s16 = sshll.u32 %s3365_s4, 4  ;;  %p39_p7 = scmp.ne.s32.totalorder %s2976_s20, %s2972_s19  ;;  %s212_s16 = int_to_ptr.hbm [resolvable:$true] %s211_s16 }
  0x1c   : > { %2669 = dma.hbm_to_vmem [thread:$0]  (!%p3061_p6), %s212_s16, 64, %s214_s22, [#allocation9]  }
  0x1d   : > { %p30_p8 = scmp.eq.s32.totalorder %s29_s28, 0  ;;  %p40_p9 = scmp.eq.s32.totalorder %s2980_s21, 0 }
  0x1e   : > { %p45_p10 = scmp.ne.s32.totalorder %s2972_s19, %s2968_s18  ;;  %p158_p11 = scmp.eq.s32.totalorder %s3044_s25, 1 }
  0x1f   : > { %s3088_s29 = scalar_select %p30_p8, %s2976_s20, %s32_s27  }
  0x20   : > { %p3090_p12 = por %p40_p9, %p39_p7  ;;  %p3096_p13 = por %p46_p1, %p45_p10 }
  0x21   : > { %3366 = sst [smem:[#allocation17_spill]] %s3088_s29  ;;  %p3100_p0 = por %p158_p11, %p39_p7 }
  0x22   : > { %p164_p2 = scmp.eq.s32.totalorder %s1903_s23, 1  ;;  %p2684_p4 = scmp.lt.s32.totalorder %s2980_s21, 2 }
  0x23   : > { %s3106_s8 = sand.u32 1, %s2976_s20   ;;  %s1910_s11 = sshll.u32 %s2980_s21, 3 }
  0x24   : > { %p3108_p6 = por %p164_p2, %p45_p10  ;;  %s1909_s10 = sshll.u32 %s3106_s8, 3 }
  0x25   : > { %s232_s14 = scalar_lea.hbm %s3352_s0, %s1910_s11  ;;  %s228_s16 = scalar_lea.vmem [#allocation2], %s1909_s10 }
  0x26   : > { %s234_s15 = sshll.u32 %s232_s14, 4  ;;  %s236_s17 = sshll.u32 %s228_s16, 4  ;;  %s235_s15 = int_to_ptr.hbm [resolvable:$true] %s234_s15  ;;  %s237_s17 = int_to_ptr.vmem [resolvable:$true] %s236_s17 }
  0x27   : > { %p3119_p7 = pnand %p2684_p4, %p3090_p12  ;;  %s243_s23 = sand.u32 1, %s2980_s21  }
  0x28   : > { %s249_s2 = scalar_lea.hbm %s3353_s1, %s2980_s21  ;;  %s225_s3 = scalar_lea.sflag [#allocation3], %s3106_s8 }
  0x29   : > { %s2842_s12 = sshra.s32 %s235_s15, 4  ;;  %p2846_p9 = pneg %p3119_p7  ;;  %s2843_s12 = int_to_ptr.hbm [resolvable:$true] %s2842_s12 }
  0x2a   : > { %s2844_s11 = scalar_lea.hbm %s2843_s12, 8  ;;  %s2849_s13 = scalar_lea.hbm %s3352_s0, 16 }
  0x2b   : > { %p2845_p8 = scmp.ne.s32.totalorder %s2843_s12, %s2844_s11  ;;  %p2850_p12 = scmp.lt.s32.totalorder %s2843_s12, %s3352_s0 }
  0x2c   : > { %p2851_p2 = scmp.lt.s32.totalorder %s2849_s13, %s2844_s11 }
  0x2d   : > { %p2847_p10 = pnand %p2846_p9, %p2845_p8 }
  0x2e   : > { %p2852_p4 = por %p2851_p2, %p2850_p12 }
  0x2f   : > { %p2848_p11 = pneg %p2847_p10 }
  0x31   : > { %p2853_p5 = pnand %p2852_p4, %p2848_p11 }
  0x33   : > { %2856 = shalt.err (!%p2853_p5)
}
  0x34   : > { %2673 = dma.hbm_to_vmem [thread:$0]  (!%p3119_p7), %s235_s15, 128, %s237_s17, %s225_s3  }
  0x35   : > { %s251_s27 = sshll.u32 %s249_s2, 4  ;;  %s246_s28 = scalar_lea.vmem [#allocation5], %s3106_s8  ;;  %s252_s27 = int_to_ptr.hbm [resolvable:$true] %s251_s27 }
  0x36   : > { %s253_s4 = sshll.u32 %s246_s28, 4  ;;  %s244_s30 = scalar_lea.sflag [#allocation6], %s243_s23  ;;  %s254_s4 = int_to_ptr.vmem [resolvable:$true] %s253_s4 }
  0x37   : > { %s2872_s10 = sshra.s32 %s252_s27, 4  ;;  %s2879_s13 = scalar_lea.hbm %s3353_s1, 2  ;;  %s2873_s10 = int_to_ptr.hbm [resolvable:$true] %s2872_s10 }
  0x38   : > { %s2874_s29 = scalar_lea.hbm %s2873_s10, 1  ;;  %p2880_p5 = scmp.lt.s32.totalorder %s2873_s10, %s3353_s1 }
  0x39   : > { %p2875_p8 = scmp.ne.s32.totalorder %s2873_s10, %s2874_s29  ;;  %p2881_p12 = scmp.lt.s32.totalorder %s2879_s13, %s2874_s29 }
  0x3b   : > { %p2877_p10 = pnand %p2875_p8, %p2846_p9  ;;  %p2882_p2 = por %p2881_p12, %p2880_p5 }
  0x3d   : > { %p2878_p11 = pneg %p2877_p10 }
  0x3f   : > { %p2883_p4 = pnand %p2882_p2, %p2878_p11 }
  0x41   : > { %2886 = shalt.err (!%p2883_p4)
}
  0x42   : > { %2676 = dma.hbm_to_vmem [thread:$0]  (!%p3119_p7), %s252_s27, 16, %s254_s4, %s244_s30  }
  0x43   : > { %262 = sbr.rel (%p3049_p3) target bundleno = 2685 (0xa7d), region = 40  ;;  %s3157_s2 = sand.u32 (!%p3049_p3), 1, %s2972_s19  }
  0x44   : > { %s1912_s8 = sshll.u32 (!%p3049_p3), %s3157_s2, 3  ;;  %s265_s15 = scalar_lea.sflag (!%p3049_p3), [#allocation3], %s3157_s2 }
  0x45   : > { %s3163_s29 = scalar_lea.vmem (!%p3049_p3), [#allocation2], %s1912_s8 }
  0x48   : > { %2947 = dma.done.wait (%p3096_p13), %s265_s15, 128  }
  0x49   : > { %2949 = vsyncadd (%p3096_p13), %s265_s15, 4294967168  ;;  %s274_s4 = sand.u32 1, %s3044_s25   ;;  %s277_s17 = scalar_lea.vmem [#allocation5], %s3157_s2 }
  0x4a   : > { %s275_s26 = scalar_lea.sflag [#allocation6], %s274_s4 }
  0x4b   : > { %2951 = dma.done.wait (%p3096_p13), %s275_s26, 16  }
  0x4c   : > { %2953 = vsyncadd (%p3096_p13), %s275_s26, 4294967280 }
  0x4d   : > { %2955 = dma.done.wait (%p46_p1), [#allocation6], 8192  }
  0x4e   : > { %2957 = vsyncadd (%p46_p1), [#allocation6], 4294959104 }
  0x4f   : > { %2959 = dma.done.wait (%p46_p1), [#allocation9], 2112  }
  0x50   : > { %2961 = vsyncadd (%p46_p1), [#allocation9], 4294965184  ;;  %v2071_v0 = vld [vmem:[#allocation7 + $0x1cc] sm:$0xf]  ;;  %v2003_v2 = vld [vmem:[#allocation7 + $0x1c0] sm:$0xf] }
  0x51   : > { %v2553_v1 = vld [vmem:[#allocation7 + $0x1e8] sm:$0xf0]  ;;  %v2536_v4 = vld [vmem:[#allocation7 + $0x1dc] sm:$0xf0]  ;;  %v2552_v46 = vld [vmem:[#allocation7 + $0x1d0] sm:$0xf] }
  0x52   : > { %v2072_v3 = vor.u32 %v2553_v1, %v2071_v0  ;;  %v2063_v5 = vld [vmem:[#allocation7 + $0x18c] sm:$0xf]  ;;  %v2004_v7 = vor.u32 %v2536_v4, %v2003_v2  ;;  %v1991_v8 = vld [vmem:[#allocation7 + $0x180] sm:$0xf]  ;;  %v2073_v47 = vld [vmem:[#allocation7 + $0x1ec] sm:$0xf0] }
  0x53   : > { %v2551_v6 = vld [vmem:[#allocation7 + $0x1a8] sm:$0xf0]  ;;  %v2533_v9 = vld [vmem:[#allocation7 + $0x19c] sm:$0xf0]  ;;  %v2076_v52 = vor.u32 %v2552_v46, %v2073_v47  ;;  %v2550_v54 = vld [vmem:[#allocation7 + $0x190] sm:$0xf] }
  0x54   : > { %662 = vmatpush.bf16.msra.mxu3 %v2072_v3  ;;  %v2064_v10 = vor.u32 %v2551_v6, %v2063_v5  ;;  %520 = vmatpush.bf16.msra.mxu0 %v2004_v7  ;;  %v1992_v11 = vor.u32 %v2533_v9, %v1991_v8  ;;  %v2055_v12 = vld [vmem:[#allocation7 + $0x14c] sm:$0xf]  ;;  %v1979_v14 = vld [vmem:[#allocation7 + $0x140] sm:$0xf]  ;;  %v2065_v55 = vld [vmem:[#allocation7 + $0x1ac] sm:$0xf0] }
  0x55   : > { %v2549_v13 = vld [vmem:[#allocation7 + $0x168] sm:$0xf0]  ;;  %v2530_v15 = vld [vmem:[#allocation7 + $0x15c] sm:$0xf0]  ;;  %v2068_v57 = vor.u32 %v2550_v54, %v2065_v55  ;;  %v2548_v58 = vld [vmem:[#allocation7 + $0x150] sm:$0xf] }
  0x56   : > { %v2056_v16 = vor.u32 %v2549_v13, %v2055_v12  ;;  %v1980_v17 = vor.u32 %v2530_v15, %v1979_v14  ;;  %v2047_v18 = vld [vmem:[#allocation7 + $0x10c] sm:$0xf]  ;;  %v1967_v20 = vld [vmem:[#allocation7 + $0x100] sm:$0xf]  ;;  %v2057_v59 = vld [vmem:[#allocation7 + $0x16c] sm:$0xf0] }
  0x57   : > { %v2547_v19 = vld [vmem:[#allocation7 + $0x128] sm:$0xf0]  ;;  %v2527_v21 = vld [vmem:[#allocation7 + $0x11c] sm:$0xf0]  ;;  %v2060_v60 = vor.u32 %v2548_v58, %v2057_v59  ;;  %v2546_v61 = vld [vmem:[#allocation7 + $0x110] sm:$0xf] }
  0x58   : > { %663 = vmatpush.bf16.msra.mxu3 %v2064_v10  ;;  %521 = vmatpush.bf16.msra.mxu0 %v1992_v11  ;;  %v2048_v22 = vor.u32 %v2547_v19, %v2047_v18  ;;  %v1968_v23 = vor.u32 %v2527_v21, %v1967_v20  ;;  %v2039_v24 = vld [vmem:[#allocation7 + $0xcc] sm:$0xf]  ;;  %v1955_v26 = vld [vmem:[#allocation7 + $0xc0] sm:$0xf]  ;;  %v2049_v62 = vld [vmem:[#allocation7 + $0x12c] sm:$0xf0] }
  0x59   : > { %v2545_v25 = vld [vmem:[#allocation7 + $0xe8] sm:$0xf0]  ;;  %v2524_v27 = vld [vmem:[#allocation7 + $0xdc] sm:$0xf0]  ;;  %v2052_v63 = vor.u32 %v2546_v61, %v2049_v62  ;;  %v2544_v0 = vld [vmem:[#allocation7 + $0xd0] sm:$0xf] }
  0x5a   : > { %v2040_v28 = vor.u32 %v2545_v25, %v2039_v24  ;;  %v1956_v29 = vor.u32 %v2524_v27, %v1955_v26  ;;  %v2031_v30 = vld [vmem:[#allocation7 + $0x8c] sm:$0xf]  ;;  %v1943_v32 = vld [vmem:[#allocation7 + $0x80] sm:$0xf]  ;;  %v2041_v1 = vld [vmem:[#allocation7 + $0xec] sm:$0xf0] }
  0x5b   : > { %v2543_v31 = vld [vmem:[#allocation7 + $0xa8] sm:$0xf0]  ;;  %v2521_v33 = vld [vmem:[#allocation7 + $0x9c] sm:$0xf0]  ;;  %v2044_v2 = vor.u32 %v2544_v0, %v2041_v1  ;;  %v2542_v3 = vld [vmem:[#allocation7 + $0x90] sm:$0xf] }
  0x5c   : > { %664 = vmatpush.bf16.msra.mxu3 %v2056_v16  ;;  %522 = vmatpush.bf16.msra.mxu0 %v1980_v17  ;;  %v2032_v34 = vor.u32 %v2543_v31, %v2031_v30  ;;  %v1944_v35 = vor.u32 %v2521_v33, %v1943_v32  ;;  %v2023_v36 = vld [vmem:[#allocation7 + $0x4c] sm:$0xf]  ;;  %v1931_v38 = vld [vmem:[#allocation7 + $0x40] sm:$0xf]  ;;  %v2033_v4 = vld [vmem:[#allocation7 + $0xac] sm:$0xf0] }
  0x5d   : > { %v2541_v37 = vld [vmem:[#allocation7 + $0x68] sm:$0xf0]  ;;  %v2518_v39 = vld [vmem:[#allocation7 + $0x5c] sm:$0xf0]  ;;  %v2036_v5 = vor.u32 %v2542_v3, %v2033_v4  ;;  %v2540_v6 = vld [vmem:[#allocation7 + $0x50] sm:$0xf] }
  0x5e   : > { %v2024_v40 = vor.u32 %v2541_v37, %v2023_v36  ;;  %v1932_v41 = vor.u32 %v2518_v39, %v1931_v38  ;;  %v2015_v42 = vld [vmem:[#allocation7 + $0xc] sm:$0xf]  ;;  %v1919_v44 = vld [vmem:[#allocation7] sm:$0xf]  ;;  %v2025_v7 = vld [vmem:[#allocation7 + $0x6c] sm:$0xf0] }
  0x5f   : > { %v2539_v43 = vld [vmem:[#allocation7 + $0x28] sm:$0xf0]  ;;  %v2515_v45 = vld [vmem:[#allocation7 + $0x1c] sm:$0xf0]  ;;  %v2538_v8 = vld [vmem:[#allocation7 + $0x10] sm:$0xf]  ;;  %v2028_v9 = vor.u32 %v2540_v6, %v2025_v7 }
  0x60   : > { %665 = vmatpush.bf16.msra.mxu3 %v2048_v22  ;;  %523 = vmatpush.bf16.msra.mxu0 %v1968_v23  ;;  %v2016_v48 = vor.u32 %v2539_v43, %v2015_v42  ;;  %v564_v49 = vld [vmem:[%s277_s17] sm:$0x1]  ;;  %v1920_v50 = vor.u32 %v2515_v45, %v1919_v44  ;;  %v2017_v10 = vld [vmem:[#allocation7 + $0x2c] sm:$0xf0]  ;;  %v2535_v12 = vld [vmem:[#allocation7 + $0x1c4] sm:$0xf] }
  0x61   : > { %v358_v51 = vld [vmem:[%s3163_s29] sm:$0xff]  ;;  %v565_v53 = vpack.c.bf16 %v564_v49, %v564_v49  ;;  %v2020_v11 = vor.u32 %v2538_v8, %v2017_v10  ;;  %v2005_v13 = vld [vmem:[#allocation7 + $0x1e0] sm:$0xf0]  ;;  %vm1459_vm15 = vcmask 1043456   ;;  %s2495_s6 = sshll.u32 %s3044_s25, 3  ;;  %s323_s27 = scalar_lea.vmem [#allocation11], %s1912_s8 }
  0x62   : > { %v3186_v56 = vpack.c.bf16 %v358_v51, %v358_v51  ;;  %v2532_v14 = vld [vmem:[#allocation7 + $0x184] sm:$0xf]  ;;  %v2008_v15 = vor.u32 %v2535_v12, %v2005_v13  ;;  %v2107_v45 = vld [vmem:[#allocation7 + $0x1d4] sm:$0xf]  ;;  %s1781_s16 = scalar_lea.hbm %s3357_s5, %s2495_s6  ;;  %s1783_s28 = sshll.u32 %s323_s27, 4  ;;  %s1784_s28 = int_to_ptr.vmem [resolvable:$true] %s1783_s28 }
  0x63   : > { %v1993_v16 = vld [vmem:[#allocation7 + $0x1a0] sm:$0xf0]  ;;  %v2561_v46 = vld [vmem:[#allocation7 + $0x1f0] sm:$0xf0]  ;;  %s1785_s30 = sshll.u32 %s1781_s16, 4  ;;  %s1771_s25 = scalar_lea.sflag [#allocation4], %s3157_s2  ;;  %s1786_s30 = int_to_ptr.hbm [resolvable:$true] %s1785_s30 }
  0x64   : > { %666 = vmatpush.bf16.msra.mxu3 %v2040_v28  ;;  %524 = vmatpush.bf16.msra.mxu0 %v1956_v29  ;;  %v1996_v17 = vor.u32 %v2532_v14, %v1993_v16  ;;  %v2529_v18 = vld [vmem:[#allocation7 + $0x144] sm:$0xf]  ;;  %v2108_v51 = vor.u32 %v2561_v46, %v2107_v45  ;;  %v2560_v54 = vld [vmem:[#allocation7 + $0x1b0] sm:$0xf0]  ;;  %v2169_v45 = vld [vmem:[#allocation7 + $0x1f8] sm:$0xf0] }
  0x65   : > { %533 = vmatpush.bf16.msra.mxu1 %v2008_v15  ;;  %v1981_v19 = vld [vmem:[#allocation7 + $0x160] sm:$0xf0]  ;;  %v2099_v58 = vld [vmem:[#allocation7 + $0x154] sm:$0xf]  ;;  %s2916_s10 = sshra.s32 %s1786_s30, 4  ;;  %s2922_s14 = scalar_lea.hbm %s3357_s5, 16  ;;  %s2917_s10 = int_to_ptr.hbm [resolvable:$true] %s2916_s10 }
  0x66   : > { %v1984_v20 = vor.u32 %v2529_v18, %v1981_v19  ;;  %v2526_v21 = vld [vmem:[#allocation7 + $0x104] sm:$0xf]  ;;  %v2559_v59 = vld [vmem:[#allocation7 + $0x170] sm:$0xf0]  ;;  %s2918_s12 = scalar_lea.hbm %s2917_s10, 8  ;;  %p2923_p7 = scmp.lt.s32.totalorder %s2917_s10, %s3357_s5 }
  0x67   : > { %v1969_v22 = vld [vmem:[#allocation7 + $0x120] sm:$0xf0]  ;;  %v2095_v61 = vld [vmem:[#allocation7 + $0x114] sm:$0xf]  ;;  %p2919_p1 = scmp.ne.s32.totalorder %s2917_s10, %s2918_s12  ;;  %p2924_p9 = scmp.lt.s32.totalorder %s2922_s14, %s2918_s12 }
  0x68   : > { %667 = vmatpush.bf16.msra.mxu3 %v2032_v34  ;;  %525 = vmatpush.bf16.msra.mxu0 %v1944_v35  ;;  %v1972_v24 = vor.u32 %v2526_v21, %v1969_v22  ;;  %v2523_v25 = vld [vmem:[#allocation7 + $0xc4] sm:$0xf]  ;;  %v2558_v62 = vld [vmem:[#allocation7 + $0x130] sm:$0xf0] }
  0x69   : > { %534 = vmatpush.bf16.msra.mxu1 %v1996_v17  ;;  %v1957_v26 = vld [vmem:[#allocation7 + $0xe0] sm:$0xf0]  ;;  %v2091_v0 = vld [vmem:[#allocation7 + $0xd4] sm:$0xf]  ;;  %p2920_p3 = pnand %p2919_p1, %p3100_p0  ;;  %p2925_p8 = por %p2924_p9, %p2923_p7 }
  0x6a   : > { %v1960_v28 = vor.u32 %v2523_v25, %v1957_v26  ;;  %v2520_v29 = vld [vmem:[#allocation7 + $0x84] sm:$0xf]  ;;  %v2557_v1 = vld [vmem:[#allocation7 + $0xf0] sm:$0xf0] }
  0x6b   : > { %v1945_v32 = vld [vmem:[#allocation7 + $0xa0] sm:$0xf0]  ;;  %v2087_v4 = vld [vmem:[#allocation7 + $0x94] sm:$0xf]  ;;  %p2921_p13 = pneg %p2920_p3 }
  0x6c   : > { %668 = vmatpush.bf16.msra.mxu3 %v2024_v40  ;;  %526 = vmatpush.bf16.msra.mxu0 %v1932_v41  ;;  %v1948_v34 = vor.u32 %v2520_v29, %v1945_v32  ;;  %v2517_v35 = vld [vmem:[#allocation7 + $0x44] sm:$0xf]  ;;  %v2083_v7 = vld [vmem:[#allocation7 + $0x54] sm:$0xf] }
  0x6d   : > { %535 = vmatpush.bf16.msra.mxu1 %v1984_v20  ;;  %v1933_v36 = vld [vmem:[#allocation7 + $0x60] sm:$0xf0]  ;;  %v2555_v8 = vld [vmem:[#allocation7 + $0x70] sm:$0xf0]  ;;  %p2926_p10 = pnand %p2925_p8, %p2921_p13 }
  0x6e   : > { %v1936_v39 = vor.u32 %v2517_v35, %v1933_v36  ;;  %v2514_v41 = vld [vmem:[#allocation7 + $0x4] sm:$0xf]  ;;  %v2554_v12 = vld [vmem:[#allocation7 + $0x30] sm:$0xf0]  ;;  %v2011_v35 = vld [vmem:[#allocation7 + $0x1c8] sm:$0xf] }
  0x6f   : > { %v1921_v42 = vld [vmem:[#allocation7 + $0x20] sm:$0xf0]  ;;  %v2537_v36 = vld [vmem:[#allocation7 + $0x1e4] sm:$0xf0] }
  0x70   : > { %669 = vmatpush.bf16.msra.mxu3 %v2016_v48  ;;  %527 = vmatpush.bf16.msra.mxu0 %v1920_v50  ;;  %v1924_v49 = vor.u32 %v2514_v41, %v1921_v42  ;;  %v1987_v42 = vld [vmem:[#allocation7 + $0x148] sm:$0xf] }
  0x71   : > { %536 = vmatpush.bf16.msra.mxu1 %v1972_v24 }
  0x73   : > { %670 = vmatmul.bf16.vlgmr.msra.gmra.mxu3 %v565_v53  ;;  %528 = vmatmul.bf16.vlgmr.msra.gmra.mxu0 %v3186_v56 }
  0x74   : > { %675 = vmatpush.bf16.msrb.mxu0 %v2076_v52 }
  0x75   : > { %537 = vmatpush.bf16.msra.mxu1 %v1960_v28 }
  0x78   : > { %676 = vmatpush.bf16.msrb.mxu0 %v2068_v57 }
  0x79   : > { %538 = vmatpush.bf16.msra.mxu1 %v1948_v34  ;;  %v2989_v34 = vmov 128.0  }
  0x7c   : > { %677 = vmatpush.bf16.msrb.mxu0 %v2060_v60  ;;  %v2100_v60 = vor.u32 %v2559_v59, %v2099_v58  ;;  %v1951_v58 = vld [vmem:[#allocation7 + $0x88] sm:$0xf] }
  0x7d   : > { %539 = vmatpush.bf16.msra.mxu1 %v1936_v39  ;;  %v2534_v39 = vld [vmem:[#allocation7 + $0x1a4] sm:$0xf0] }
  0x7e   : > { %v2522_v59 = vld [vmem:[#allocation7 + $0xa4] sm:$0xf0] }
  0x80   : > { %678 = vmatpush.bf16.msrb.mxu0 %v2052_v63  ;;  %v2096_v63 = vor.u32 %v2558_v62, %v2095_v61  ;;  %v1952_v61 = vor.u32 %v2522_v59, %v1951_v58  ;;  %v1939_v62 = vld [vmem:[#allocation7 + $0x48] sm:$0xf]  ;;  %v3207_v59 = vld [vmem:[#allocation8 + $0x30] sm:$0xff] }
  0x81   : > { %540 = vmatpush.bf16.msra.mxu1 %v1924_v49  ;;  %v1975_v49 = vld [vmem:[#allocation7 + $0x108] sm:$0xf] }
  0x84   : > { %679 = vmatpush.bf16.msrb.mxu0 %v2044_v2  ;;  %541 = vmatmul.bf16.vlgmr.msra.gmra.mxu1 %v3186_v56  ;;  %v2092_v2 = vor.u32 %v2557_v1, %v2091_v0 }
  0x85   : > { %781 = vmatpush.bf16.msrb.mxu1 %v2108_v51 }
  0x88   : > { %680 = vmatpush.bf16.msrb.mxu0 %v2036_v5  ;;  %v2556_v5 = vld [vmem:[#allocation7 + $0xb0] sm:$0xf0] }
  0x89   : > { %v2088_v6 = vor.u32 %v2556_v5, %v2087_v4  ;;  %v2167_v5 = vld [vmem:[#allocation7 + $0x1d8] sm:$0xf] }
  0x8c   : > { %681 = vmatpush.bf16.msrb.mxu0 %v2028_v9  ;;  %v2084_v9 = vor.u32 %v2555_v8, %v2083_v7 }
  0x90   : > { %682 = vmatpush.bf16.msrb.mxu0 %v2020_v11  ;;  %v2079_v11 = vld [vmem:[#allocation7 + $0x14] sm:$0xf] }
  0x91   : > { %v2080_v13 = vor.u32 %v2554_v12, %v2079_v11  ;;  %v2159_v12 = vld [vmem:[#allocation7 + $0x198] sm:$0xf] }
  0x93   : > { %683 = vmatmul.bf16.vlgmr.msrb.gmra.mxu0 %v565_v53  ;;  %v2103_v53 = vld [vmem:[#allocation7 + $0x194] sm:$0xf] }
  0x94   : > { %v2104_v57 = vor.u32 %v2560_v54, %v2103_v53  ;;  %v1963_v53 = vld [vmem:[#allocation7 + $0xc8] sm:$0xf] }
  0x95   : > { %v2525_v54 = vld [vmem:[#allocation7 + $0xe4] sm:$0xf0] }
  0x96   : > { %782 = vmatpush.bf16.msrb.mxu1 %v2104_v57  ;;  %v1964_v57 = vor.u32 %v2525_v54, %v1963_v53  ;;  %v3200_v54 = vld [vmem:[#allocation8 + $0x38] sm:$0xff] }
  0x97   : > { %1050 = vmatpush.bf16.msra.mxu0 %v3200_v54 }
  0x9a   : > { %783 = vmatpush.bf16.msrb.mxu1 %v2100_v60 }
  0x9b   : > { %1051 = vmatpush.bf16.msra.mxu0 %v3207_v59 }
  0x9e   : > { %784 = vmatpush.bf16.msrb.mxu1 %v2096_v63  ;;  %v2519_v63 = vld [vmem:[#allocation7 + $0x64] sm:$0xf0] }
  0x9f   : > { %v1940_v1 = vor.u32 %v2519_v63, %v1939_v62  ;;  %v3213_v62 = vld [vmem:[#allocation8 + $0x28] sm:$0xff] }
  0xa0   : > { %v3215_v63 = vld [vmem:[#allocation8 + $0x68] sm:$0xff]  ;;  %1052 = vmatpush.bf16.msra.mxu0 %v3213_v62 }
  0xa2   : > { %785 = vmatpush.bf16.msrb.mxu1 %v2092_v2  ;;  %v1927_v2 = vld [vmem:[#allocation7 + $0x8] sm:$0xf] }
  0xa6   : > { %786 = vmatpush.bf16.msrb.mxu1 %v2088_v6  ;;  %v2577_v6 = vld [vmem:[#allocation7 + $0x1f4] sm:$0xf0] }
  0xaa   : > { %787 = vmatpush.bf16.msrb.mxu1 %v2084_v9 }
  0xae   : > { %788 = vmatpush.bf16.msrb.mxu1 %v2080_v13  ;;  %v2575_v13 = vld [vmem:[#allocation7 + $0x1b4] sm:$0xf0] }
  0xf0   : > { %v529_v23 = vpop.f32.mrf.mxu0 }
  0xf1   : > { %v561_v30 = vmul.f32 1.442695, %v529_v23  ;;  %v560_v43 = vadd.f32 1.0, %v529_v23  ;;  %vm559_vm1 = vcmp.gt.f32.partialorder %v529_v23, 0.0 }
  0xf6   : > { %v671_v27 = vpop.f32.mrf.mxu3 }
  0xf7   : > { %v690_v31 = vmul.f32 1.442695, %v671_v27  ;;  %v689_v37 = vadd.f32 1.0, %v671_v27  ;;  %vm688_vm0 = vcmp.gt.f32.partialorder %v671_v27, 0.0 }
  0xf8   : > { %v531_v33 = vpop.f32.mrf.mxu0 }
  0xf9   : > { %2729 = vpow2.f32 %v690_v31 }
  0xfa   : > { %2731 = vpow2.f32 %v561_v30 }
  0xfe   : > { %v673_v38 = vpop.f32.mrf.mxu3 }
  0xff   : > { %v2730_v40 = vpop.eup %2729  ;;  %v2012_v38 = vor.u32 %v2537_v36, %v2011_v35  ;;  %v2127_v36 = vld [vmem:[#allocation7 + $0x98] sm:$0xf] }
 0x100   : > { %v692_v44 = vsel %vm688_vm0, %v689_v37, %v2730_v40  ;;  %v2732_v47 = vpop.eup %2731  ;;  %v1999_v37 = vld [vmem:[#allocation7 + $0x188] sm:$0xf]  ;;  %vm1449_vm0 = vcmask 64512  }
 0x101   : > { %v693_v48 = vmul.f32 8.0, %v692_v44  ;;  %v563_v52 = vsel %vm559_vm1, %v560_v43, %v2732_v47  ;;  %v3190_v19 = vpop.f32.mrf.mxu1  ;;  %546 = vmatpush.bf16.msra.mxu2 %v2012_v38  ;;  %v2000_v40 = vor.u32 %v2534_v39, %v1999_v37  ;;  %v2531_v43 = vld [vmem:[#allocation7 + $0x164] sm:$0xf0]  ;;  %v2576_v44 = vld [vmem:[#allocation7 + $0x1dc] sm:$0xf] }
 0x102   : > { %v1988_v47 = vor.u32 %v2531_v43, %v1987_v42  ;;  %v2567_v37 = vld [vmem:[#allocation7 + $0xb4] sm:$0xf0]  ;;  %v2566_v38 = vld [vmem:[#allocation7 + $0x9c] sm:$0xf] }
 0x103   : > { %v694_v50 = vperm.slane %v693_v48, 0  ;;  %v2172_v48 = vor.u32 %v2576_v44, %v2169_v45  ;;  %v2128_v39 = vor.u32 %v2567_v37, %v2127_v36  ;;  %v2119_v42 = vld [vmem:[#allocation7 + $0x58] sm:$0xf]  ;;  %v2564_v44 = vld [vmem:[#allocation7 + $0x5c] sm:$0xf] }
 0x104   : > { %v2565_v43 = vld [vmem:[#allocation7 + $0x74] sm:$0xf0] }
 0x105   : > { %v695_v55 = vmul.f32 %v694_v50, %v563_v52  ;;  %547 = vmatpush.bf16.msra.mxu2 %v2000_v40  ;;  %v2528_v50 = vld [vmem:[#allocation7 + $0x124] sm:$0xf0]  ;;  %935 = vmatpush.bf16.msrb.mxu3 %v2172_v48  ;;  %v2129_v40 = vld [vmem:[#allocation7 + $0xb8] sm:$0xf0]  ;;  %v2120_v45 = vor.u32 %v2565_v43, %v2119_v42  ;;  %v2563_v48 = vld [vmem:[#allocation7 + $0x34] sm:$0xf0] }
 0x106   : > { %v1976_v52 = vor.u32 %v2528_v50, %v1975_v49  ;;  %v2562_v50 = vld [vmem:[#allocation7 + $0x1c] sm:$0xf]  ;;  %v2379_v42 = vld [vmem:[#allocation7 + $0x1c0] sm:$0xf] }
 0x107   : > { %696 = vadd.xlane.f32.xlu0 %v695_v55  ;;  %v2615_v43 = vld [vmem:[#allocation7 + $0x1dc] sm:$0xf0] }
 0x109   : > { %v544_v29 = vpop.f32.mrf.mxu1  ;;  %548 = vmatpush.bf16.msra.mxu2 %v1988_v47  ;;  %v2111_v47 = vld [vmem:[#allocation7 + $0x18] sm:$0xf] }
 0x10d   : > { %549 = vmatpush.bf16.msra.mxu2 %v1976_v52  ;;  %v2112_v52 = vor.u32 %v2563_v48, %v2111_v47  ;;  %v2339_v47 = vld [vmem:[#allocation7 + $0x140] sm:$0xf] }
 0x10e   : > { %v2605_v48 = vld [vmem:[#allocation7 + $0x15c] sm:$0xf0] }
 0x110   : > { %v684_v3 = vpop.f32.mrf.mxu0 }
 0x111   : > { %v714_v26 = vperm.slane %v684_v3, 0  ;;  %550 = vmatpush.bf16.msra.mxu2 %v1964_v57  ;;  %v2516_v3 = vld [vmem:[#allocation7 + $0x24] sm:$0xf0] }
 0x112   : > { %v1928_v8 = vor.u32 %v2516_v3, %v1927_v2  ;;  %v3221_v2 = vld [vmem:[#allocation8 + $0x60] sm:$0xff] }
 0x115   : > { %551 = vmatpush.bf16.msra.mxu2 %v1952_v61 }
 0x118   : > { %v686_v10 = vpop.f32.mrf.mxu0 }
 0x119   : > { %552 = vmatpush.bf16.msra.mxu2 %v1940_v1  ;;  %v2168_v10 = vor.u32 %v2577_v6, %v2167_v5  ;;  %v3219_v1 = vld [vmem:[#allocation8 + $0x20] sm:$0xff]  ;;  %v3225_v5 = vld [vmem:[#allocation8 + $0x18] sm:$0xff] }
 0x11a   : > { %1053 = vmatpush.bf16.msra.mxu0 %v3219_v1  ;;  %v3227_v6 = vld [vmem:[#allocation8 + $0x58] sm:$0xff] }
 0x11d   : > { %553 = vmatpush.bf16.msra.mxu2 %v1928_v8 }
 0x11e   : > { %1054 = vmatpush.bf16.msra.mxu0 %v3225_v5 }
 0x120   : > { %554 = vmatmul.bf16.vlgmr.msra.gmra.mxu2 %v3186_v56 }
 0x121   : > { %922 = vmatpush.bf16.msrb.mxu2 %v2168_v10  ;;  %v3231_v10 = vld [vmem:[#allocation8 + $0x10] sm:$0xff] }
 0x122   : > { %1055 = vmatpush.bf16.msra.mxu0 %v3231_v10 }
 0x17a   : > { %v697_v14 = vpop.xlane.xlu0 %696 }
 0x17b   : > { %v698_v15 = vadd.f32 1e-06, %v697_v14 }
 0x17d   : > { %2733 = vrcp.f32 %v698_v15  ;;  %v710_v20 = vand.u32 2147483648, %v698_v15  ;;  %v708_v22 = vand.u32 2147483647, %v698_v15  ;;  %vm704_vm3 = vweird.f32 %v698_v15 }
 0x17e   : > { %2735 = vrcp.f32 %v2989_v34  ;;  %v2137_v34 = vld [vmem:[#allocation7 + $0xf8] sm:$0xf0] }
 0x17f   : > { %v711_v24 = vor.u32 1.1754944e-38, %v710_v20  ;;  %vm709_vm5 = vcmp.eq.f32.partialorder %v708_v22, 8.507059e+37  ;;  %v2573_v20 = vld [vmem:[#allocation7 + $0x174] sm:$0xf0] }
 0x183   : > { %v2734_v16 = vpop.eup %2733 }
 0x184   : > { %v700_v17 = vmul.f32 %v2734_v16, %v698_v15  ;;  %vm705_vm2 = vweird.f32 %v2734_v16  ;;  %v2736_v41 = vpop.eup %2735  ;;  %v2160_v15 = vor.u32 %v2575_v13, %v2159_v12  ;;  %v3235_v13 = vld [vmem:[#allocation10] sm:$0xf] }
 0x185   : > { %vm706_vm4 = vmor %vm704_vm3, %vm705_vm2  ;;  %v797_v46 = vmul.f32 128.0, %v2736_v41  ;;  %vm801_vm6 = vweird.f32 %v2736_v41 }
 0x186   : > { %v701_v18 = vsub.f32 1.0, %v700_v17  ;;  %923 = vmatpush.bf16.msrb.mxu2 %v2160_v15 }
 0x187   : > { %v798_v51 = vsub.f32 1.0, %v797_v46  ;;  %v2121_v46 = vld [vmem:[#allocation7 + $0x78] sm:$0xf0] }
 0x188   : > { %v702_v21 = vmul.f32 %v2734_v16, %v701_v18  ;;  %v2151_v18 = vld [vmem:[#allocation7 + $0x158] sm:$0xf]  ;;  %v2124_v49 = vor.u32 %v2564_v44, %v2121_v46  ;;  %v2359_v44 = vld [vmem:[#allocation7 + $0x180] sm:$0xf] }
 0x189   : > { %v799_v55 = vmul.f32 %v2736_v41, %v798_v51  ;;  %v2152_v22 = vor.u32 %v2573_v20, %v2151_v18  ;;  %v2113_v51 = vld [vmem:[#allocation7 + $0x38] sm:$0xf0]  ;;  %v823_v20 = vperm.slane %v3235_v13, 1 }
 0x18a   : > { %v703_v23 = vadd.f32 %v2734_v16, %v702_v21  ;;  %v2572_v21 = vld [vmem:[#allocation7 + $0x15c] sm:$0xf]  ;;  %v2116_v53 = vor.u32 %v2562_v50, %v2113_v51 }
 0x18b   : > { %v800_v60 = vadd.f32 %v2736_v41, %v799_v55  ;;  %924 = vmatpush.bf16.msrb.mxu2 %v2152_v22  ;;  %v3202_v55 = vld [vmem:[#allocation8 + $0x78] sm:$0xff] }
 0x18c   : > { %v707_v25 = vsel %vm706_vm4, %v2734_v16, %v703_v23  ;;  %v2161_v16 = vld [vmem:[#allocation7 + $0x1b8] sm:$0xf0]  ;;  %1063 = vmatpush.bf16.msra.mxu1 %v3202_v55 }
 0x18d   : > { %v712_v27 = vsel %vm709_vm5, %v711_v24, %v707_v25  ;;  %v3192_v0 = vsel %vm801_vm6, %v2736_v41, %v800_v60  ;;  %v2153_v23 = vld [vmem:[#allocation7 + $0x178] sm:$0xf0]  ;;  %v2143_v25 = vld [vmem:[#allocation7 + $0x118] sm:$0xf]  ;;  %v2132_v41 = vor.u32 %v2566_v38, %v2129_v40  ;;  %v3209_v60 = vld [vmem:[#allocation8 + $0x70] sm:$0xff] }
 0x18e   : > { %v713_v28 = vmul.f32 %v712_v27, %v697_v14  ;;  %v2574_v14 = vld [vmem:[#allocation7 + $0x19c] sm:$0xf]  ;;  %v2156_v24 = vor.u32 %v2572_v21, %v2153_v23 }
 0x18f   : > { %v2164_v17 = vor.u32 %v2574_v14, %v2161_v16  ;;  %v2570_v27 = vld [vmem:[#allocation7 + $0x11c] sm:$0xf]  ;;  %v821_v16 = vperm.slane %v3235_v13, 0 }
 0x190   : > { %v715_v30 = vmul.f32 %v714_v26, %v713_v28  ;;  %v2571_v26 = vld [vmem:[#allocation7 + $0x134] sm:$0xf0]  ;;  %v2145_v28 = vld [vmem:[#allocation7 + $0x138] sm:$0xf0]  ;;  %1064 = vmatpush.bf16.msra.mxu1 %v3209_v60 }
 0x191   : > { %936 = vmatpush.bf16.msrb.mxu3 %v2164_v17  ;;  %v2144_v56 = vor.u32 %v2571_v26, %v2143_v25  ;;  %v2148_v29 = vor.u32 %v2570_v27, %v2145_v28  ;;  %v3246_v25 = vld [vmem:[#allocation8 + $0x8] sm:$0xff]  ;;  %v3254_v27 = vld [vmem:[#allocation8 + $0x40] sm:$0xff] }
 0x192   : > { %v716_v31 = vpack.c.bf16 %v715_v30, %v715_v30  ;;  %v2135_v30 = vld [vmem:[#allocation7 + $0xd8] sm:$0xf]  ;;  %v3248_v26 = vld [vmem:[#allocation8 + $0x48] sm:$0xff]  ;;  %1056 = vmatpush.bf16.msra.mxu0 %v3246_v25 }
 0x193   : > { %925 = vmatpush.bf16.msrb.mxu2 %v2144_v56 }
 0x194   : > { %789 = vmatmul.bf16.vlgmr.msrb.gmra.mxu1 %v716_v31  ;;  %v2569_v31 = vld [vmem:[#allocation7 + $0xf4] sm:$0xf0] }
 0x195   : > { %937 = vmatpush.bf16.msrb.mxu3 %v2156_v24  ;;  %1065 = vmatpush.bf16.msra.mxu1 %v3215_v63 }
 0x199   : > { %938 = vmatpush.bf16.msrb.mxu3 %v2148_v29  ;;  %1066 = vmatpush.bf16.msra.mxu1 %v3221_v2 }
 0x19d   : > { %1067 = vmatpush.bf16.msra.mxu1 %v3227_v6 }
 0x1a3   : > { %v555_v14 = vpop.f32.mrf.mxu2 }
 0x1ab   : > { %v557_v22 = vpop.f32.mrf.mxu2 }
 0x1ac   : > { %v2595_v22 = vld [vmem:[#allocation7 + $0xdc] sm:$0xf0] }
 0x211   : > { %v790_v32 = vpop.f32.mrf.mxu1 }
 0x212   : > { %794 = vadd.xlane.f32.xlu0 %v790_v32 }
 0x219   : > { %v792_v33 = vpop.f32.mrf.mxu1 }
 0x21a   : > { %v2136_v33 = vor.u32 %v2569_v31, %v2135_v30 }
 0x21c   : > { %926 = vmatpush.bf16.msrb.mxu2 %v2136_v33 }
 0x220   : > { %927 = vmatpush.bf16.msrb.mxu2 %v2128_v39 }
 0x224   : > { %928 = vmatpush.bf16.msrb.mxu2 %v2120_v45  ;;  %v2380_v45 = vor.u32 %v2615_v43, %v2379_v42  ;;  %v2606_v42 = vld [vmem:[#allocation7 + $0x164] sm:$0xf0]  ;;  %v2604_v43 = vld [vmem:[#allocation7 + $0x14c] sm:$0xf] }
 0x228   : > { %929 = vmatpush.bf16.msrb.mxu2 %v2112_v52 }
 0x22c   : > { %1358 = vmatpush.bf16.msra.mxu2 %v2380_v45 }
 0x285   : > { %v795_v4 = vpop.xlane.xlu0 %794 }
 0x286   : > { %v803_v7 = vmul.f32 %v3192_v0, %v795_v4 }
 0x288   : > { %v3195_v9 = vsub.f32 %v790_v32, %v803_v7  ;;  %v2568_v32 = vld [vmem:[#allocation7 + $0xdc] sm:$0xf] }
 0x289   : > { %v2140_v35 = vor.u32 %v2568_v32, %v2137_v34 }
 0x28a   : > { %v805_v11 = vmul.f32 %v3195_v9, %v3195_v9 }
 0x28b   : > { %939 = vmatpush.bf16.msrb.mxu3 %v2140_v35 }
 0x28c   : > { %806 = vadd.xlane.f32.xlu1 %v805_v11  ;;  %v3233_v11 = vld [vmem:[#allocation8 + $0x50] sm:$0xff] }
 0x28d   : > { %1068 = vmatpush.bf16.msra.mxu1 %v3233_v11 }
 0x28f   : > { %940 = vmatpush.bf16.msrb.mxu3 %v2132_v41 }
 0x291   : > { %1069 = vmatpush.bf16.msra.mxu1 %v3248_v26 }
 0x293   : > { %941 = vmatpush.bf16.msrb.mxu3 %v2124_v49  ;;  %v2340_v49 = vor.u32 %v2605_v48, %v2339_v47  ;;  %v2585_v47 = vld [vmem:[#allocation7 + $0x5c] sm:$0xf0] }
 0x295   : > { %1070 = vmatpush.bf16.msra.mxu1 %v3254_v27 }
 0x297   : > { %942 = vmatpush.bf16.msrb.mxu3 %v2116_v53 }
 0x2ff   : > { %v807_v57 = vpop.xlane.xlu1 %806 }
 0x300   : > { %v808_v58 = vmul.f32 %v807_v57, %v3192_v0  ;;  %v2319_v57 = vld [vmem:[#allocation7 + $0x100] sm:$0xf] }
 0x302   : > { %v809_v61 = vadd.f32 1e-05, %v808_v58  ;;  %v2600_v58 = vld [vmem:[#allocation7 + $0x11c] sm:$0xf0] }
 0x304   : > { %2737 = vrsqrt.f32 %v809_v61  ;;  %vm816_vm8 = vweird.f32 %v809_v61 }
 0x30a   : > { %v2738_v3 = vpop.eup %2737 }
 0x30b   : > { %v811_v4 = vmul.f32 %v2738_v3, %v809_v61  ;;  %vm817_vm7 = vweird.f32 %v2738_v3  ;;  %v2320_v61 = vor.u32 %v2600_v58, %v2319_v57  ;;  %v2601_v57 = vld [vmem:[#allocation7 + $0x124] sm:$0xf0]  ;;  %v2599_v58 = vld [vmem:[#allocation7 + $0x10c] sm:$0xf] }
 0x30c   : > { %vm818_vm9 = vmor %vm816_vm8, %vm817_vm7 }
 0x30d   : > { %v812_v7 = vmul.f32 %v2738_v3, %v811_v4  ;;  %v2381_v4 = vld [vmem:[#allocation7 + $0x1e0] sm:$0xf0] }
 0x30f   : > { %v813_v8 = vmul.f32 0.5, %v812_v7  ;;  %v2387_v7 = vld [vmem:[#allocation7 + $0x1c8] sm:$0xf] }
 0x311   : > { %v814_v12 = vsub.f32 1.5, %v813_v8 }
 0x313   : > { %v815_v15 = vmul.f32 %v2738_v3, %v814_v12  ;;  %v2616_v12 = vld [vmem:[#allocation7 + $0x1e4] sm:$0xf0] }
 0x315   : > { %v819_v17 = vsel %vm818_vm9, %v2738_v3, %v815_v15  ;;  %v2613_v3 = vld [vmem:[#allocation7 + $0x1c4] sm:$0xf]  ;;  %v2389_v15 = vld [vmem:[#allocation7 + $0x1e8] sm:$0xf0] }
 0x316   : > { %v820_v18 = vmul.f32 %v819_v17, %v3195_v9  ;;  %v3252_v9 = vld [vmem:[#allocation8] sm:$0xff]  ;;  %v2384_v8 = vor.u32 %v2613_v3, %v2381_v4  ;;  %v2388_v17 = vor.u32 %v2616_v12, %v2387_v7 }
 0x317   : > { %1057 = vmatpush.bf16.msra.mxu0 %v3252_v9  ;;  %v2239_v7 = vld [vmem:[#allocation7] sm:$0xf] }
 0x318   : > { %v822_v21 = vmul.f32 %v821_v16, %v820_v18  ;;  %1371 = vmatpush.bf16.msra.mxu3 %v2384_v8  ;;  %v2580_v8 = vld [vmem:[#allocation7 + $0x1c] sm:$0xf0] }
 0x319   : > { %v2240_v12 = vor.u32 %v2580_v8, %v2239_v7  ;;  %v2581_v7 = vld [vmem:[#allocation7 + $0x24] sm:$0xf0]  ;;  %v2579_v8 = vld [vmem:[#allocation7 + $0xc] sm:$0xf] }
 0x31a   : > { %v824_v23 = vadd.f32 %v823_v20, %v822_v21  ;;  %v2299_v21 = vld [vmem:[#allocation7 + $0xc0] sm:$0xf] }
 0x31b   : > { %1384 = vmatpush.bf16.msrb.mxu0 %v2388_v17  ;;  %v2307_v17 = vld [vmem:[#allocation7 + $0xc8] sm:$0xf] }
 0x31c   : > { %v825_v24 = vpack.c.bf16 %v824_v23, %v824_v23  ;;  %v2300_v23 = vor.u32 %v2595_v22, %v2299_v21  ;;  %v2596_v21 = vld [vmem:[#allocation7 + $0xe4] sm:$0xf0]  ;;  %v2594_v22 = vld [vmem:[#allocation7 + $0xcc] sm:$0xf] }
 0x31e   : > { %930 = vmatmul.bf16.vlgmr.msrb.gmra.mxu2 %v825_v24  ;;  %943 = vmatmul.bf16.vlgmr.msrb.gmra.mxu3 %v825_v24  ;;  %v2608_v24 = vld [vmem:[#allocation7 + $0x184] sm:$0xf] }
 0x3a1   : > { %v931_v56 = vpop.f32.mrf.mxu2  ;;  %v944_v28 = vpop.f32.mrf.mxu3 }
 0x3a2   : > { %v948_v29 = vadd.f32 %v931_v56, %v3190_v19  ;;  %v949_v30 = vadd.f32 %v944_v28, %v555_v14  ;;  %v2610_v19 = vld [vmem:[#allocation7 + $0x19c] sm:$0xf0]  ;;  %v2614_v14 = vld [vmem:[#allocation7 + $0x1cc] sm:$0xf]  ;;  %v2361_v56 = vld [vmem:[#allocation7 + $0x1a0] sm:$0xf0] }
 0x3a3   : > { %v2360_v46 = vor.u32 %v2610_v19, %v2359_v44  ;;  %v2392_v18 = vor.u32 %v2614_v14, %v2389_v15  ;;  %v2367_v28 = vld [vmem:[#allocation7 + $0x188] sm:$0xf]  ;;  %v2349_v44 = vld [vmem:[#allocation7 + $0x168] sm:$0xf0]  ;;  %v2593_v14 = vld [vmem:[#allocation7 + $0xc4] sm:$0xf] }
 0x3a4   : > { %v950_v31 = vmax.f32 %v948_v29, 0.0  ;;  %v951_v32 = vmax.f32 %v949_v30, 0.0  ;;  %v2364_v29 = vor.u32 %v2608_v24, %v2361_v56  ;;  %v2611_v30 = vld [vmem:[#allocation7 + $0x1a4] sm:$0xf0]  ;;  %v2352_v19 = vor.u32 %v2604_v43, %v2349_v44  ;;  %v2301_v15 = vld [vmem:[#allocation7 + $0xe0] sm:$0xf0] }
 0x3a5   : > { %1359 = vmatpush.bf16.msra.mxu2 %v2360_v46  ;;  %1397 = vmatpush.bf16.msrb.mxu1 %v2392_v18  ;;  %v2259_v46 = vld [vmem:[#allocation7 + $0x40] sm:$0xf]  ;;  %v2304_v18 = vor.u32 %v2593_v14, %v2301_v15  ;;  %v2308_v24 = vor.u32 %v2596_v21, %v2307_v17  ;;  %v2583_v43 = vld [vmem:[#allocation7 + $0x44] sm:$0xf]  ;;  %v2335_v17 = vld [vmem:[#allocation7 + $0x110] sm:$0xf] }
 0x3a6   : > { %v952_v33 = vpack.c.bf16 %v950_v31, %v950_v31  ;;  %v953_v34 = vpack.c.bf16 %v951_v32, %v951_v32  ;;  %v2609_v31 = vld [vmem:[#allocation7 + $0x18c] sm:$0xf]  ;;  %1372 = vmatpush.bf16.msra.mxu3 %v2364_v29  ;;  %v2260_v48 = vor.u32 %v2585_v47, %v2259_v46  ;;  %v2617_v29 = vld [vmem:[#allocation7 + $0x1ec] sm:$0xf0]  ;;  %v2261_v44 = vld [vmem:[#allocation7 + $0x60] sm:$0xf0] }
 0x3a7   : > { %v2369_v32 = vld [vmem:[#allocation7 + $0x1a8] sm:$0xf0]  ;;  %v2586_v46 = vld [vmem:[#allocation7 + $0x64] sm:$0xf0] }
 0x3a8   : > { %1058 = vmatmul.bf16.vlgmr.msra.gmra.mxu0 %v952_v33  ;;  %1071 = vmatmul.bf16.vlgmr.msra.gmra.mxu1 %v953_v34  ;;  %v2368_v33 = vor.u32 %v2611_v30, %v2367_v28  ;;  %v2372_v34 = vor.u32 %v2609_v31, %v2369_v32  ;;  %v2395_v28 = vld [vmem:[#allocation7 + $0x1d0] sm:$0xf]  ;;  %v2588_v31 = vld [vmem:[#allocation7 + $0x84] sm:$0xf]  ;;  %v2584_v47 = vld [vmem:[#allocation7 + $0x4c] sm:$0xf] }
 0x3a9   : > { %v933_v35 = vpop.f32.mrf.mxu2  ;;  %v946_v36 = vpop.f32.mrf.mxu3  ;;  %1360 = vmatpush.bf16.msra.mxu2 %v2340_v49  ;;  %v2598_v49 = vld [vmem:[#allocation7 + $0x104] sm:$0xf]  ;;  %v2396_v30 = vor.u32 %v2617_v29, %v2395_v28  ;;  %v2295_v29 = vld [vmem:[#allocation7 + $0x90] sm:$0xf] }
 0x3aa   : > { %v2279_v35 = vld [vmem:[#allocation7 + $0x80] sm:$0xf]  ;;  %1385 = vmatpush.bf16.msrb.mxu0 %v2368_v33  ;;  %1398 = vmatpush.bf16.msrb.mxu1 %v2372_v34  ;;  %v2281_v32 = vld [vmem:[#allocation7 + $0xa0] sm:$0xf0]  ;;  %v2287_v33 = vld [vmem:[#allocation7 + $0x88] sm:$0xf] }
 0x3ab   : > { %v2590_v36 = vld [vmem:[#allocation7 + $0x9c] sm:$0xf0]  ;;  %v2284_v34 = vor.u32 %v2588_v31, %v2281_v32 }
 0x3ad   : > { %1361 = vmatpush.bf16.msra.mxu2 %v2320_v61  ;;  %v2329_v61 = vld [vmem:[#allocation7 + $0x128] sm:$0xf0] }
 0x3ae   : > { %1399 = vmatpush.bf16.msrb.mxu1 %v2352_v19  ;;  %v2332_v4 = vor.u32 %v2599_v58, %v2329_v61  ;;  %v2264_v19 = vor.u32 %v2583_v43, %v2261_v44  ;;  %v2578_v58 = vld [vmem:[#allocation7 + $0x4] sm:$0xf] }
 0x3af   : > { %v2241_v61 = vld [vmem:[#allocation7 + $0x20] sm:$0xf0] }
 0x3b1   : > { %1362 = vmatpush.bf16.msra.mxu2 %v2300_v23  ;;  %v2309_v23 = vld [vmem:[#allocation7 + $0xe8] sm:$0xf0] }
 0x3b2   : > { %1400 = vmatpush.bf16.msrb.mxu1 %v2332_v4  ;;  %v2312_v56 = vor.u32 %v2594_v22, %v2309_v23  ;;  %v2244_v4 = vor.u32 %v2578_v58, %v2241_v61  ;;  %v2315_v23 = vld [vmem:[#allocation7 + $0xd0] sm:$0xf] }
 0x3b6   : > { %1401 = vmatpush.bf16.msrb.mxu1 %v2312_v56 }
 0x425   : > { %v1059_v37 = vpop.f32.mrf.mxu0  ;;  %v1072_v38 = vpop.f32.mrf.mxu1 }
 0x426   : > { %v1073_v39 = vadd.f32 %v1072_v38, %v1059_v37  ;;  %v2280_v37 = vor.u32 %v2590_v36, %v2279_v35  ;;  %v2603_v38 = vld [vmem:[#allocation7 + $0x144] sm:$0xf]  ;;  %v2591_v35 = vld [vmem:[#allocation7 + $0xa4] sm:$0xf0]  ;;  %v2589_v36 = vld [vmem:[#allocation7 + $0x8c] sm:$0xf] }
 0x428   : > { %1076 = vadd.xlane.f32.xlu1 %v1073_v39  ;;  %1363 = vmatpush.bf16.msra.mxu2 %v2280_v37  ;;  %v2289_v37 = vld [vmem:[#allocation7 + $0xa8] sm:$0xf0] }
 0x42c   : > { %1364 = vmatpush.bf16.msra.mxu2 %v2260_v48  ;;  %v2269_v48 = vld [vmem:[#allocation7 + $0x68] sm:$0xf0] }
 0x42d   : > { %v1061_v40 = vpop.f32.mrf.mxu0  ;;  %v1074_v41 = vpop.f32.mrf.mxu1 }
 0x42e   : > { %v2347_v40 = vld [vmem:[#allocation7 + $0x148] sm:$0xf] }
 0x42f   : > { %v2348_v45 = vor.u32 %v2606_v42, %v2347_v40  ;;  %v2375_v40 = vld [vmem:[#allocation7 + $0x190] sm:$0xf] }
 0x430   : > { %1365 = vmatpush.bf16.msra.mxu2 %v2240_v12  ;;  %v2249_v12 = vld [vmem:[#allocation7 + $0x28] sm:$0xf0] }
 0x431   : > { %1386 = vmatpush.bf16.msrb.mxu0 %v2348_v45  ;;  %v2267_v45 = vld [vmem:[#allocation7 + $0x48] sm:$0xf]  ;;  %v2252_v15 = vor.u32 %v2579_v8, %v2249_v12 }
 0x434   : > { %1410 = vmatpush.bf16.msrb.mxu2 %v2396_v30  ;;  %v2592_v30 = vld [vmem:[#allocation7 + $0xac] sm:$0xf0] }
 0x435   : > { %v2296_v32 = vor.u32 %v2592_v30, %v2295_v29 }
 0x49b   : > { %v1077_v50 = vpop.xlane.xlu1 %1076 }
 0x49c   : > { %v1078_v51 = vmul.f32 %v1077_v50, %v3192_v0  ;;  %v2321_v50 = vld [vmem:[#allocation7 + $0x120] sm:$0xf0] }
 0x49e   : > { %v3260_v52 = vsub.f32 %v1073_v39, %v1078_v51  ;;  %v2341_v39 = vld [vmem:[#allocation7 + $0x160] sm:$0xf0]  ;;  %v2327_v51 = vld [vmem:[#allocation7 + $0x108] sm:$0xf] }
 0x49f   : > { %v2344_v41 = vor.u32 %v2603_v38, %v2341_v39  ;;  %v2328_v3 = vor.u32 %v2601_v57, %v2327_v51  ;;  %v2288_v38 = vor.u32 %v2591_v35, %v2287_v33  ;;  %v2292_v39 = vor.u32 %v2589_v36, %v2289_v37  ;;  %v2355_v51 = vld [vmem:[#allocation7 + $0x150] sm:$0xf] }
 0x4a0   : > { %v1080_v53 = vmul.f32 %v3260_v52, %v3260_v52  ;;  %v2275_v33 = vld [vmem:[#allocation7 + $0x50] sm:$0xf] }
 0x4a1   : > { %1373 = vmatpush.bf16.msra.mxu3 %v2344_v41  ;;  %1387 = vmatpush.bf16.msrb.mxu0 %v2328_v3  ;;  %v2612_v41 = vld [vmem:[#allocation7 + $0x1ac] sm:$0xf0]  ;;  %v2247_v3 = vld [vmem:[#allocation7 + $0x8] sm:$0xf] }
 0x4a2   : > { %1081 = vadd.xlane.f32.xlu2 %v1080_v53  ;;  %v2324_v53 = vor.u32 %v2598_v49, %v2321_v50  ;;  %v2376_v42 = vor.u32 %v2612_v41, %v2375_v40  ;;  %1402 = vmatpush.bf16.msrb.mxu1 %v2292_v39  ;;  %v2268_v49 = vor.u32 %v2586_v46, %v2267_v45  ;;  %v2255_v36 = vld [vmem:[#allocation7 + $0x10] sm:$0xf]  ;;  %v1096_v45 = vperm.slane %v3235_v13, 2 }
 0x4a3   : > { %v2272_v50 = vor.u32 %v2584_v47, %v2269_v48  ;;  %v2248_v14 = vor.u32 %v2581_v7, %v2247_v3  ;;  %v2582_v37 = vld [vmem:[#allocation7 + $0x2c] sm:$0xf0]  ;;  %v1098_v46 = vperm.slane %v3235_v13, 3 }
 0x4a4   : > { %1411 = vmatpush.bf16.msrb.mxu2 %v2376_v42  ;;  %v2256_v40 = vor.u32 %v2582_v37, %v2255_v36 }
 0x4a5   : > { %1374 = vmatpush.bf16.msra.mxu3 %v2324_v53  ;;  %1388 = vmatpush.bf16.msrb.mxu0 %v2308_v24  ;;  %v2607_v53 = vld [vmem:[#allocation7 + $0x16c] sm:$0xf0] }
 0x4a6   : > { %v2356_v57 = vor.u32 %v2607_v53, %v2355_v51  ;;  %1403 = vmatpush.bf16.msrb.mxu1 %v2272_v50  ;;  %v2597_v24 = vld [vmem:[#allocation7 + $0xec] sm:$0xf0] }
 0x4a7   : > { %v2316_v28 = vor.u32 %v2597_v24, %v2315_v23  ;;  %v2751_v50 = vld [vmem:[%s3163_s29] sm:$0xff] }
 0x4a8   : > { %1412 = vmatpush.bf16.msrb.mxu2 %v2356_v57 }
 0x4a9   : > { %1375 = vmatpush.bf16.msra.mxu3 %v2304_v18  ;;  %1389 = vmatpush.bf16.msrb.mxu0 %v2288_v38  ;;  %v2602_v18 = vld [vmem:[#allocation7 + $0x12c] sm:$0xf0] }
 0x4aa   : > { %v2336_v21 = vor.u32 %v2602_v18, %v2335_v17  ;;  %1404 = vmatpush.bf16.msrb.mxu1 %v2252_v15 }
 0x4ac   : > { %1413 = vmatpush.bf16.msrb.mxu2 %v2336_v21 }
 0x4ad   : > { %1376 = vmatpush.bf16.msra.mxu3 %v2284_v34  ;;  %1390 = vmatpush.bf16.msrb.mxu0 %v2268_v49  ;;  %v2587_v34 = vld [vmem:[#allocation7 + $0x6c] sm:$0xf0] }
 0x4ae   : > { %v2276_v35 = vor.u32 %v2587_v34, %v2275_v33  ;;  %v2625_v33 = vld [vmem:[#allocation7 + $0x1f0] sm:$0xf0] }
 0x4af   : > { %v2424_v34 = vld [vmem:[#allocation7 + $0x194] sm:$0xf] }
 0x4b0   : > { %1414 = vmatpush.bf16.msrb.mxu2 %v2316_v28 }
 0x4b1   : > { %1377 = vmatpush.bf16.msra.mxu3 %v2264_v19  ;;  %1391 = vmatpush.bf16.msrb.mxu0 %v2248_v14 }
 0x4b4   : > { %1415 = vmatpush.bf16.msrb.mxu2 %v2296_v32  ;;  %v2428_v32 = vld [vmem:[#allocation7 + $0x1d4] sm:$0xf] }
 0x4b5   : > { %1378 = vmatpush.bf16.msra.mxu3 %v2244_v4 }
 0x4b8   : > { %1416 = vmatpush.bf16.msrb.mxu2 %v2276_v35  ;;  %v2429_v35 = vor.u32 %v2625_v33, %v2428_v32 }
 0x4ba   : > { %1556 = vmatpush.bf16.msra.mxu0 %v2429_v35  ;;  %v2639_v35 = vld [vmem:[#allocation7 + $0x1b4] sm:$0xf0] }
 0x4bc   : > { %1417 = vmatpush.bf16.msrb.mxu2 %v2256_v40 }
 0x515   : > { %v1082_v22 = vpop.xlane.xlu2 %1081 }
 0x516   : > { %v1083_v56 = vmul.f32 %v1082_v22, %v3192_v0 }
 0x518   : > { %v1084_v31 = vadd.f32 1e-05, %v1083_v56 }
 0x51a   : > { %2739 = vrsqrt.f32 %v1084_v31  ;;  %vm1091_vm11 = vweird.f32 %v1084_v31 }
 0x520   : > { %v2740_v38 = vpop.eup %2739 }
 0x521   : > { %v1086_v39 = vmul.f32 %v2740_v38, %v1084_v31  ;;  %vm1092_vm10 = vweird.f32 %v2740_v38 }
 0x522   : > { %vm1093_vm12 = vmor %vm1091_vm11, %vm1092_vm10 }
 0x523   : > { %v1087_v41 = vmul.f32 %v2740_v38, %v1086_v39  ;;  %v2622_v39 = vld [vmem:[#allocation7 + $0x130] sm:$0xf0] }
 0x525   : > { %v1088_v42 = vmul.f32 0.5, %v1087_v41  ;;  %v2412_v41 = vld [vmem:[#allocation7 + $0xd4] sm:$0xf] }
 0x527   : > { %v1089_v43 = vsub.f32 1.5, %v1088_v42  ;;  %v2621_v42 = vld [vmem:[#allocation7 + $0xf0] sm:$0xf0] }
 0x529   : > { %v1090_v44 = vmul.f32 %v2740_v38, %v1089_v43  ;;  %v2413_v43 = vor.u32 %v2621_v42, %v2412_v41  ;;  %v2466_v42 = vld [vmem:[#allocation7 + $0x138] sm:$0xf0] }
 0x52b   : > { %v1094_v19 = vsel %vm1093_vm12, %v2740_v38, %v1090_v44  ;;  %v2408_v44 = vld [vmem:[#allocation7 + $0x94] sm:$0xf] }
 0x52c   : > { %v1095_v47 = vmul.f32 %v1094_v19, %v3260_v52  ;;  %v2620_v19 = vld [vmem:[#allocation7 + $0xb0] sm:$0xf0] }
 0x52e   : > { %v1097_v48 = vmul.f32 %v1096_v45, %v1095_v47  ;;  %v2409_v47 = vor.u32 %v2620_v19, %v2408_v44  ;;  %v2456_v44 = vld [vmem:[#allocation7 + $0xd8] sm:$0xf] }
 0x52f   : > { %v2633_v19 = vld [vmem:[#allocation7 + $0xf4] sm:$0xf0] }
 0x530   : > { %v1099_v49 = vadd.f32 %v1098_v46, %v1097_v48  ;;  %v2404_v48 = vld [vmem:[#allocation7 + $0x54] sm:$0xf] }
 0x532   : > { %v3273_v51 = vadd.f32 %v2751_v50, %v1099_v49  ;;  %v2619_v49 = vld [vmem:[#allocation7 + $0x70] sm:$0xf0] }
 0x533   : > { %v2405_v50 = vor.u32 %v2619_v49, %v2404_v48  ;;  %v2457_v48 = vor.u32 %v2633_v19, %v2456_v44  ;;  %v2458_v49 = vld [vmem:[#allocation7 + $0xf8] sm:$0xf0] }
 0x534   : > { %v1101_v53 = vpack.c.bf16 %v3273_v51, %v3273_v51 }
 0x536   : > { %1366 = vmatmul.bf16.vlgmr.msra.gmra.mxu2 %v1101_v53  ;;  %1379 = vmatmul.bf16.vlgmr.msra.gmra.mxu3 %v1101_v53 }
 0x537   : > { %1392 = vmatmul.bf16.vlgmr.msrb.gmra.mxu0 %v1101_v53  ;;  %1405 = vmatmul.bf16.vlgmr.msrb.gmra.mxu1 %v1101_v53 }
 0x546   : > { %1418 = vmatmul.bf16.vlgmr.msrb.gmra.mxu2 %v1101_v53  ;;  %v2400_v53 = vld [vmem:[#allocation7 + $0x14] sm:$0xf] }
 0x5b4   : > { %v3277_v57 = vpop.f32.mrf.mxu0  ;;  %v1406_v52 = vpop.f32.mrf.mxu1 }
 0x5b5   : > { %v1430_v58 = vmul.f32 1.442695, %v1406_v52  ;;  %v1429_v7 = vadd.f32 1.0, %v1406_v52  ;;  %vm1428_vm13 = vcmp.gt.f32.partialorder %v1406_v52, 0.0  ;;  %v2618_v52 = vld [vmem:[#allocation7 + $0x30] sm:$0xf0] }
 0x5b7   : > { %2741 = vpow2.f32 %v1430_v58  ;;  %v2401_v58 = vor.u32 %v2618_v52, %v2400_v53  ;;  %v2448_v53 = vld [vmem:[#allocation7 + $0x98] sm:$0xf] }
 0x5b8   : > { %v2631_v52 = vld [vmem:[#allocation7 + $0xb4] sm:$0xf0] }
 0x5b9   : > { %v1367_v61 = vpop.f32.mrf.mxu2  ;;  %v3279_v3 = vpop.f32.mrf.mxu3 }
 0x5ba   : > { %v1425_v4 = vmul.f32 1.442695, %v1367_v61  ;;  %v1424_v18 = vadd.f32 1.0, %v1367_v61  ;;  %vm1423_vm14 = vcmp.gt.f32.partialorder %v1367_v61, 0.0 }
 0x5bc   : > { %2743 = vpow2.f32 %v1425_v4  ;;  %v1395_v8 = vpop.f32.mrf.mxu0  ;;  %v1408_v12 = vpop.f32.mrf.mxu1 }
 0x5bd   : > { %v2742_v14 = vpop.eup %2741 }
 0x5be   : > { %v1432_v15 = vsel %vm1428_vm13, %v1429_v7, %v2742_v14 }
 0x5bf   : > { %v1434_v17 = vpack.c.bf16 %v1432_v15, %v1432_v15 }
 0x5c1   : > { %1442 = vmatpush.bf16.xpose.msrb.mxu3 %v1434_v17  ;;  %v1369_v21 = vpop.f32.mrf.mxu2  ;;  %v1382_v22 = vpop.f32.mrf.mxu3 }
 0x5c2   : > { %v2744_v23 = vpop.eup %2743 }
 0x5c3   : > { %v1427_v24 = vsel %vm1423_vm14, %v1424_v18, %v2744_v23 }
 0x5c4   : > { %v1433_v56 = vpack.c.bf16 %v1427_v24, %v1427_v24  ;;  %v2488_v24 = vld [vmem:[#allocation7 + $0x1d8] sm:$0xf] }
 0x5c8   : > { %1443 = vmatmul.bf16.vlgmr.msrb.gmra.mxu3 %v1433_v56  ;;  %v2641_v56 = vld [vmem:[#allocation7 + $0x1f4] sm:$0xf0] }
 0x5c9   : > { %v1419_v28 = vpop.f32.mrf.mxu2 }
 0x5ca   : > { %v1455_v29 = vpack.c.bf16 %v1419_v28, %v1419_v28  ;;  %v2489_v28 = vor.u32 %v2641_v56, %v2488_v24 }
 0x5cc   : > { %v1461_v30 = vsel %vm1459_vm15, %v1455_v29, 0  ;;  %v2490_v29 = vld [vmem:[#allocation7 + $0x1f8] sm:$0xf0]  ;;  %1688 = vmatpush.bf16.msra.mxu1 %v2489_v28 }
 0x5cd   : > { %1470 = vmatpush.bf16.msra.mxu3 %v1461_v30 }
 0x5d1   : > { %1720 = vmatpush.bf16.msrb.mxu3 %v3200_v54  ;;  %v1421_v31 = vpop.f32.mrf.mxu2  ;;  %v2624_v54 = vld [vmem:[#allocation7 + $0x1b0] sm:$0xf0] }
 0x5d2   : > { %v2425_v36 = vor.u32 %v2624_v54, %v2424_v34  ;;  %v2480_v34 = vld [vmem:[#allocation7 + $0x198] sm:$0xf]  ;;  %v2638_v54 = vld [vmem:[#allocation7 + $0x19c] sm:$0xf] }
 0x5d4   : > { %1557 = vmatpush.bf16.msra.mxu0 %v2425_v36  ;;  %v2481_v36 = vor.u32 %v2639_v35, %v2480_v34 }
 0x5d5   : > { %1721 = vmatpush.bf16.msrb.mxu3 %v3207_v59 }
 0x5d6   : > { %1689 = vmatpush.bf16.msra.mxu1 %v2481_v36 }
 0x5d9   : > { %1722 = vmatpush.bf16.msrb.mxu3 %v3213_v62 }
 0x5dd   : > { %1723 = vmatpush.bf16.msrb.mxu3 %v3219_v1 }
 0x5e1   : > { %1724 = vmatpush.bf16.msrb.mxu3 %v3225_v5 }
 0x5e5   : > { %1725 = vmatpush.bf16.msrb.mxu3 %v3231_v10  ;;  %v2420_v10 = vld [vmem:[#allocation7 + $0x154] sm:$0xf] }
 0x5e9   : > { %1726 = vmatpush.bf16.msrb.mxu3 %v3246_v25  ;;  %v2623_v25 = vld [vmem:[#allocation7 + $0x170] sm:$0xf0] }
 0x5ea   : > { %v2421_v38 = vor.u32 %v2623_v25, %v2420_v10  ;;  %v2474_v25 = vld [vmem:[#allocation7 + $0x178] sm:$0xf0] }
 0x5ec   : > { %1558 = vmatpush.bf16.msra.mxu0 %v2421_v38 }
 0x5ed   : > { %1727 = vmatpush.bf16.msrb.mxu3 %v3252_v9  ;;  %v2416_v9 = vld [vmem:[#allocation7 + $0x114] sm:$0xf] }
 0x5ee   : > { %v2417_v40 = vor.u32 %v2622_v39, %v2416_v9  ;;  %v2464_v9 = vld [vmem:[#allocation7 + $0x118] sm:$0xf] }
 0x5ef   : > { %v2635_v39 = vld [vmem:[#allocation7 + $0x134] sm:$0xf0] }
 0x5f0   : > { %1559 = vmatpush.bf16.msra.mxu0 %v2417_v40  ;;  %v2634_v40 = vld [vmem:[#allocation7 + $0x11c] sm:$0xf]  ;;  %v2465_v41 = vor.u32 %v2635_v39, %v2464_v9 }
 0x5f4   : > { %1560 = vmatpush.bf16.msra.mxu0 %v2413_v43  ;;  %v2469_v43 = vor.u32 %v2634_v40, %v2466_v42 }
 0x5f8   : > { %1561 = vmatpush.bf16.msra.mxu0 %v2409_v47  ;;  %v2632_v47 = vld [vmem:[#allocation7 + $0xdc] sm:$0xf] }
 0x5fc   : > { %1562 = vmatpush.bf16.msra.mxu0 %v2405_v50  ;;  %v2461_v50 = vor.u32 %v2632_v47, %v2458_v49 }
 0x600   : > { %1563 = vmatpush.bf16.msra.mxu0 %v2401_v58  ;;  %v2630_v58 = vld [vmem:[#allocation7 + $0x9c] sm:$0xf] }
 0x604   : > { %1733 = vmatpush.bf16.msrb.mxu0 %v3202_v55 }
 0x608   : > { %1734 = vmatpush.bf16.msrb.mxu0 %v3209_v60 }
 0x60c   : > { %1735 = vmatpush.bf16.msrb.mxu0 %v3215_v63 }
 0x610   : > { %1736 = vmatpush.bf16.msrb.mxu0 %v3221_v2 }
 0x614   : > { %1737 = vmatpush.bf16.msrb.mxu0 %v3227_v6 }
 0x618   : > { %1738 = vmatpush.bf16.msrb.mxu0 %v3233_v11 }
 0x61c   : > { %1739 = vmatpush.bf16.msrb.mxu0 %v3248_v26  ;;  %v2640_v26 = vld [vmem:[#allocation7 + $0x1dc] sm:$0xf] }
 0x61d   : > { %v2493_v30 = vor.u32 %v2640_v26, %v2490_v29 }
 0x61f   : > { %1701 = vmatpush.bf16.msra.mxu2 %v2493_v30 }
 0x620   : > { %1740 = vmatpush.bf16.msrb.mxu0 %v3254_v27 }
 0x64b   : > { %v1444_v59 = vpop.f32.mrf.mxu3 }
 0x64c   : > { %v1448_v62 = vmul.f32 8.0, %v1444_v59  ;;  %v2482_v59 = vld [vmem:[#allocation7 + $0x1b8] sm:$0xf0] }
 0x64e   : > { %v1454_v1 = vpack.c.bf16 %v1448_v62, %v1448_v62  ;;  %v1450_v37 = vsel %vm1449_vm0, %v1448_v62, 0.0  ;;  %v2485_v62 = vor.u32 %v2638_v54, %v2482_v59 }
 0x64f   : > { %1451 = vadd.xlane.f32.xlu2 %v1450_v37  ;;  %v2637_v37 = vld [vmem:[#allocation7 + $0x174] sm:$0xf0] }
 0x650   : > { %2397 = vmatmul.msk.bf16.vlgmr.msra.gmra.mxu3 %vm1449_vm0, %v1454_v1  ;;  %1702 = vmatpush.bf16.msra.mxu2 %v2485_v62  ;;  %v2472_v1 = vld [vmem:[#allocation7 + $0x158] sm:$0xf] }
 0x651   : > { %v2473_v10 = vor.u32 %v2637_v37, %v2472_v1 }
 0x653   : > { %v1446_v5 = vpop.f32.mrf.mxu3  ;;  %1690 = vmatpush.bf16.msra.mxu1 %v2473_v10 }
 0x654   : > { %v2636_v5 = vld [vmem:[#allocation7 + $0x15c] sm:$0xf] }
 0x655   : > { %v2477_v38 = vor.u32 %v2636_v5, %v2474_v25 }
 0x657   : > { %1703 = vmatpush.bf16.msra.mxu2 %v2477_v38  ;;  %1691 = vmatpush.bf16.msra.mxu1 %v2465_v41 }
 0x65b   : > { %1704 = vmatpush.bf16.msra.mxu2 %v2469_v43  ;;  %1692 = vmatpush.bf16.msra.mxu1 %v2457_v48 }
 0x65f   : > { %1705 = vmatpush.bf16.msra.mxu2 %v2461_v50 }
 0x6c2   : > { %v1452_v61 = vpop.xlane.xlu2 %1451 }
 0x6c3   : > { %v1453_v4 = vadd.f32 1e-06, %v1452_v61  ;;  %v2449_v61 = vor.u32 %v2631_v52, %v2448_v53 }
 0x6c5   : > { %2745 = vrcp.f32 %v1453_v4  ;;  %v1487_v14 = vand.u32 2147483648, %v1453_v4  ;;  %v1485_v55 = vand.u32 2147483647, %v1453_v4  ;;  %vm1481_vm2 = vweird.f32 %v1453_v4  ;;  %1693 = vmatpush.bf16.msra.mxu1 %v2449_v61 }
 0x6c7   : > { %v1488_v17 = vor.u32 1.1754944e-38, %v1487_v14  ;;  %vm1486_vm4 = vcmp.eq.f32.partialorder %v1485_v55, 8.507059e+37  ;;  %v2628_v14 = vld [vmem:[#allocation7 + $0x5c] sm:$0xf] }
 0x6c8   : > { %v2442_v55 = vld [vmem:[#allocation7 + $0x78] sm:$0xf0] }
 0x6cb   : > { %v2746_v7 = vpop.eup %2745 }
 0x6cc   : > { %v1477_v8 = vmul.f32 %v2746_v7, %v1453_v4  ;;  %vm1482_vm1 = vweird.f32 %v2746_v7  ;;  %v2450_v4 = vld [vmem:[#allocation7 + $0xb8] sm:$0xf0] }
 0x6cd   : > { %vm1483_vm3 = vmor %vm1481_vm2, %vm1482_vm1 }
 0x6ce   : > { %v1478_v12 = vsub.f32 1.0, %v1477_v8  ;;  %v2440_v8 = vld [vmem:[#allocation7 + $0x58] sm:$0xf] }
 0x6d0   : > { %v1479_v15 = vmul.f32 %v2746_v7, %v1478_v12  ;;  %v2629_v12 = vld [vmem:[#allocation7 + $0x74] sm:$0xf0] }
 0x6d2   : > { %v1480_v60 = vadd.f32 %v2746_v7, %v1479_v15  ;;  %v2441_v15 = vor.u32 %v2629_v12, %v2440_v8 }
 0x6d3   : > { %v1472_v63 = vpop.f32.mrf.mxu3 }
 0x6d4   : > { %v1484_v2 = vsel %vm1483_vm3, %v2746_v7, %v1480_v60  ;;  %v2453_v7 = vor.u32 %v2630_v58, %v2450_v4  ;;  %v2445_v60 = vor.u32 %v2628_v14, %v2442_v55  ;;  %1694 = vmatpush.bf16.msra.mxu1 %v2441_v15 }
 0x6d5   : > { %v1489_v6 = vsel %vm1486_vm4, %v1488_v17, %v1484_v2  ;;  %v2627_v17 = vld [vmem:[#allocation7 + $0x34] sm:$0xf0]  ;;  %v2626_v2 = vld [vmem:[#allocation7 + $0x1c] sm:$0xf] }
 0x6d6   : > { %v1490_v18 = vmul.f32 %v1489_v6, %v1472_v63  ;;  %1706 = vmatpush.bf16.msra.mxu2 %v2453_v7  ;;  %v2432_v63 = vld [vmem:[#allocation7 + $0x18] sm:$0xf] }
 0x6d7   : > { %v2433_v6 = vor.u32 %v2627_v17, %v2432_v63 }
 0x6d8   : > { %v1491_v21 = vpack.c.bf16 %v1490_v18, %v1490_v18  ;;  %v2434_v18 = vld [vmem:[#allocation7 + $0x38] sm:$0xf0] }
 0x6d9   : > { %1695 = vmatpush.bf16.msra.mxu1 %v2433_v6 }
 0x6da   : > { %1564 = vmatmul.bf16.vlgmr.msra.gmra.mxu0 %v1491_v21  ;;  %1707 = vmatpush.bf16.msra.mxu2 %v2445_v60  ;;  %v2437_v21 = vor.u32 %v2626_v2, %v2434_v18 }
 0x6db   : > { %v1474_v11 = vpop.f32.mrf.mxu3 }
 0x6de   : > { %1708 = vmatpush.bf16.msra.mxu2 %v2437_v21 }
 0x757   : > { %v1565_v22 = vpop.f32.mrf.mxu0 }
 0x758   : > { %1569 = vadd.xlane.f32.xlu0 %v1565_v22 }
 0x75f   : > { %v1567_v23 = vpop.f32.mrf.mxu0 }
 0x7cb   : > { %v1570_v31 = vpop.xlane.xlu0 %1569 }
 0x7cc   : > { %v1571_v32 = vmul.f32 %v1570_v31, %v3192_v0 }
 0x7ce   : > { %v3298_v27 = vsub.f32 %v1565_v22, %v1571_v32 }
 0x7d0   : > { %v1573_v33 = vmul.f32 %v3298_v27, %v3298_v27 }
 0x7d2   : > { %1574 = vadd.xlane.f32.xlu1 %v1573_v33 }
 0x845   : > { %v1575_v11 = vpop.xlane.xlu1 %1574 }
 0x846   : > { %v1576_v22 = vmul.f32 %v1575_v11, %v3192_v0 }
 0x848   : > { %v1577_v23 = vadd.f32 1e-05, %v1576_v22 }
 0x84a   : > { %2747 = vrsqrt.f32 %v1577_v23  ;;  %vm1584_vm6 = vweird.f32 %v1577_v23 }
 0x850   : > { %v2748_v24 = vpop.eup %2747 }
 0x851   : > { %v1579_v56 = vmul.f32 %v2748_v24, %v1577_v23  ;;  %vm1585_vm5 = vweird.f32 %v2748_v24 }
 0x852   : > { %vm1586_vm7 = vmor %vm1584_vm6, %vm1585_vm5 }
 0x853   : > { %v1580_v26 = vmul.f32 %v2748_v24, %v1579_v56 }
 0x855   : > { %v1581_v28 = vmul.f32 0.5, %v1580_v26 }
 0x857   : > { %v1582_v29 = vsub.f32 1.5, %v1581_v28 }
 0x859   : > { %v1583_v30 = vmul.f32 %v2748_v24, %v1582_v29 }
 0x85b   : > { %v1587_v31 = vsel %vm1586_vm7, %v2748_v24, %v1583_v30 }
 0x85c   : > { %v1588_v32 = vmul.f32 %v1587_v31, %v3298_v27 }
 0x85e   : > { %v1589_v33 = vmul.f32 %v1588_v32, %v821_v16 }
 0x860   : > { %v1590_v34 = vadd.f32 %v1589_v33, %v823_v20 }
 0x862   : > { %v1591_v35 = vpack.c.bf16 %v1590_v34, %v1590_v34 }
 0x864   : > { %1696 = vmatmul.bf16.vlgmr.msra.gmra.mxu1 %v1591_v35  ;;  %1709 = vmatmul.bf16.vlgmr.msra.gmra.mxu2 %v1591_v35 }
 0x8e1   : > { %v1697_v54 = vpop.f32.mrf.mxu1 }
 0x8e2   : > { %v1714_v36 = vadd.f32 %v1697_v54, %v3279_v3 }
 0x8e4   : > { %v1716_v59 = vmax.f32 %v1714_v36, 0.0 }
 0x8e6   : > { %v1718_v62 = vpack.c.bf16 %v1716_v59, %v1716_v59 }
 0x8e7   : > { %v1710_v1 = vpop.f32.mrf.mxu2 }
 0x8e8   : > { %v1715_v37 = vadd.f32 %v1710_v1, %v3277_v57  ;;  %1728 = vmatmul.bf16.vlgmr.msrb.gmra.mxu3 %v1718_v62 }
 0x8e9   : > { %v1699_v5 = vpop.f32.mrf.mxu1 }
 0x8ea   : > { %v1717_v27 = vmax.f32 %v1715_v37, 0.0 }
 0x8ec   : > { %v1719_v10 = vpack.c.bf16 %v1717_v27, %v1717_v27 }
 0x8ee   : > { %1741 = vmatmul.bf16.vlgmr.msrb.gmra.mxu0 %v1719_v10 }
 0x8ef   : > { %v1712_v16 = vpop.f32.mrf.mxu2 }
 0x96b   : > { %v1729_v25 = vpop.f32.mrf.mxu3  ;;  %v1742_v38 = vpop.f32.mrf.mxu0 }
 0x96c   : > { %v1743_v20 = vadd.f32 %v1742_v38, %v1729_v25 }
 0x96e   : > { %1746 = vadd.xlane.f32.xlu2 %v1743_v20 }
 0x973   : > { %v1731_v9 = vpop.f32.mrf.mxu3  ;;  %v1744_v39 = vpop.f32.mrf.mxu0 }
 0x9e1   : > { %v1747_v40 = vpop.xlane.xlu2 %1746 }
 0x9e2   : > { %v1748_v3 = vmul.f32 %v1747_v40, %v3192_v0 }
 0x9e4   : > { %v1749_v41 = vsub.f32 %v1743_v20, %v1748_v3 }
 0x9e6   : > { %v1750_v42 = vmul.f32 %v1749_v41, %v1749_v41 }
 0x9e8   : > { %1751 = vadd.xlane.f32.xlu0 %v1750_v42 }
 0xa5b   : > { %v1752_v57 = vpop.xlane.xlu0 %1751 }
 0xa5c   : > { %v1753_v43 = vmul.f32 %v1752_v57, %v3192_v0 }
 0xa5e   : > { %v1754_v44 = vadd.f32 1e-05, %v1753_v43 }
 0xa60   : > { %2749 = vrsqrt.f32 %v1754_v44  ;;  %vm1761_vm9 = vweird.f32 %v1754_v44 }
 0xa66   : > { %v2750_v19 = vpop.eup %2749 }
 0xa67   : > { %v1756_v47 = vmul.f32 %v2750_v19, %v1754_v44  ;;  %vm1762_vm8 = vweird.f32 %v2750_v19 }
 0xa68   : > { %vm1763_vm10 = vmor %vm1761_vm9, %vm1762_vm8 }
 0xa69   : > { %v1757_v48 = vmul.f32 %v2750_v19, %v1756_v47 }
 0xa6b   : > { %v1758_v49 = vmul.f32 0.5, %v1757_v48 }
 0xa6d   : > { %v1759_v50 = vsub.f32 1.5, %v1758_v49 }
 0xa6f   : > { %v1760_v53 = vmul.f32 %v2750_v19, %v1759_v50 }
 0xa71   : > { %v1764_v52 = vsel %vm1763_vm10, %v2750_v19, %v1760_v53 }
 0xa72   : > { %v1765_v58 = vmul.f32 %v1764_v52, %v1749_v41 }
 0xa74   : > { %v1766_v0 = vmul.f32 %v1765_v58, %v1096_v45 }
 0xa76   : > { %v1767_v61 = vadd.f32 %v1766_v0, %v1098_v46 }
 0xa78   : > { %v1768_v4 = vadd.f32 %v1767_v61, %v3273_v51 }
 0xa7a   : > { %1769 = vst [vmem:[%s323_s27] sm:$0xff] %v1768_v4 }
 0xa7b   : > { %2929 = shalt.err (!%p2926_p10)
}
 0xa7c   : > { %2658 = dma.vmem_to_hbm [thread:$0]  (%p3100_p0), %s1784_s28, 128, %s1786_s30, %s1771_s25  }
 0xa7d PF: > { %s1797_s2 = sand.u32 1, %s2968_s18   ;;  %p3372_p11 = scmp.ge.s32.totalorder %s2980_s21, 2 }
 0xa7e   : > { %s1798_s15 = scalar_lea.sflag [#allocation4], %s1797_s2 }
 0xa7f   : > { %p2678_p5 = pnand %p3372_p11, %p3108_p6 }
 0xa81   : > { %p2679_p12 = pneg %p2678_p5 }
 0xa83   : > { %2963 = dma.done.wait (%p2679_p12), %s1798_s15, 128  }
 0xa84   : > { %2965 = vsyncadd (%p2679_p12), %s1798_s15, 4294967168  ;;  %s3373_s29 = sld [smem:[#allocation17_spill]]  ;;  %p22_p2 = scmp.ge.s32.totalorder %s3076_s24, 4  }
 0xa85   : > { %s3374_s18 = smov %s2972_s19  ;;  %s3375_s19 = smov %s2976_s20 }
 0xa86   : > { %s3377_s21 = smov %s3076_s24  ;;  %24 = sbr.rel (!%p22_p2) target bundleno = 12 (0xc), region = 110 }
 0xa8a   : > { %s3376_s20 = smov %s3373_s29 }
 0xa8b   :  { %1804 = vsyncpa [#allocation3], 1 }
 0xa8c   :  { %1806 = vsyncpa [#allocation3 + $0x1], 1 }
 0xa8d   :  { %1807 = vsyncpa [#allocation6], 1 }
 0xa8e   :  { %1809 = vsyncpa [#allocation6 + $0x1], 1 }
 0xa8f   :  { %1810 = vsyncpa [#allocation9], 1 }
 0xa90   :  { %1811 = vsyncpa [#allocation4], 1 }
 0xa91   :  { %1813 = vsyncpa [#allocation4 + $0x1], 1 }

</bundles_post_ra>
